<compile_context>
chip_gen: v7x
topology: tpu7x:2x2x1
jax: 0.10.0
libtpu: 0.0.40
codegen_flags: <defaults>
</compile_context>

<pallas_src>
import functools
import math

import numpy as np

import jax
import jax.numpy as jnp
from jax.experimental import pallas as pl
from jax.experimental.pallas import tpu as pltpu


# --------------------------- edge-weight schedule -----------------------------

def _edge_weights(n_layers):
    # start_gcn: w = 1; hidden layer l: 1*(l+2) + 1**(l+2) = l+3;
    # end_gcn: (n_layers+2) + 1 = n_layers + 3.
    return (1.0,) + tuple(float(l + 3) for l in range(n_layers)) + (float(n_layers + 3),)


# ------------------------------ Pallas kernel ---------------------------------

def _textgcn_kernel(tokens_ref, emb_hbm, w_ref, b_ref, o_ref, xbuf, sem, *, edge_ws):
    """Fused TextGCN forward (single grid step, everything VMEM-resident).

    tokens_ref : [N]            int32 node tokens (SMEM, scalar prefetch)
    emb_hbm    : [corpus, DPAD] padded embedding table (HBM, manual DMA gather)
    w_ref      : [L+3, DPAD, DPAD] zero-padded weights (gcn layers, end, fc)
    b_ref      : [L+3, 1, DPAD]    zero-padded biases
    o_ref      : [TAIL, DPAD]      fc logits of the last TAIL nodes (row -1 used)
    xbuf       : [N, DPAD]         VMEM scratch for gathered node features
    sem        : DMA sems, one per gathered row
    edge_ws    : static python floats, per-layer chain edge weight
    """
    n, dpad = xbuf.shape
    n_gcn = len(edge_ws) - 1                     # start + hidden (relu'd) layers

    # ---- fused embedding gather: N row DMAs HBM -> VMEM --------------------
    copies = []
    for i in range(n):                           # static unroll, N is small
        tok = tokens_ref[i]
        cp = pltpu.make_async_copy(emb_hbm.at[pl.ds(tok, 1), :],
                                   xbuf.at[pl.ds(i, 1), :],
                                   sem.at[i])
        cp.start()
        copies.append(cp)
    for cp in copies:
        cp.wait()

    h = xbuf[...]                                # [N, DPAD] f32 (lanes >= emb are 0)

    # Chain-graph GCN propagation:
    #   out[i] = diag[i] * xw[i] + off[i] * xw[i-1]
    # diag/off are shape-derived constants; only rows 0 and 1 deviate from the
    # bulk scalar, so use two hoisted masks + immediates (no HBM inputs).
    row = jax.lax.broadcasted_iota(jnp.int32, (n, dpad), 0)
    row0 = row == 0
    row1 = row == 1

    def propagate(xw, w):
        d_bulk = 1.0 / (1.0 + w)                 # 1/deg for rows >= 1
        o_bulk = w / (1.0 + w)                   # edge scale for rows >= 2
        o_row1 = w / math.sqrt(1.0 + w)          # edge scale for row 1
        diag = jnp.where(row0, 1.0, d_bulk)
        off = jnp.where(row0, 0.0, jnp.where(row1, o_row1, o_bulk))
        shifted = pltpu.roll(xw, shift=1, axis=0)    # row i <- row i-1 (XLU)
        return diag * xw + off * shifted             # off[0]==0 kills the wrap

    # start_gcn + hidden layers (relu), statically unrolled (n_gcn is tiny).
    # TODO(synk): switch to lax.fori_loop with dynamic w_ref[l] if n_layers grows.
    for l in range(n_gcn):
        xw = jnp.dot(h, w_ref[l], preferred_element_type=jnp.float32)
        h = jnp.maximum(propagate(xw, edge_ws[l]) + b_ref[l], 0.0)

    # end_gcn (no relu).
    xw = jnp.dot(h, w_ref[n_gcn], preferred_element_type=jnp.float32)
    h = propagate(xw, edge_ws[n_gcn]) + b_ref[n_gcn]

    # fc only on the last sublane tile; only row N-1 is consumed by the caller.
    tail = o_ref.shape[0]
    h_tail = h if tail == n else h[n - tail:, :]
    logits = jnp.dot(h_tail, w_ref[n_gcn + 1], preferred_element_type=jnp.float32)
    o_ref[...] = (logits + b_ref[n_gcn + 1]).astype(o_ref.dtype)


def textgcn_fused(tokens, emb_pad, w_slab, b_slab, *, n_layers):
    n = tokens.shape[0]
    dpad = emb_pad.shape[1]
    l_all = w_slab.shape[0]
    tail = min(n, 8)
    kernel = functools.partial(_textgcn_kernel, edge_ws=_edge_weights(n_layers))

    grid_spec = pltpu.PrefetchScalarGridSpec(
        num_scalar_prefetch=1,                   # tokens -> SMEM
        grid=(1,),
        in_specs=[
            pl.BlockSpec(memory_space=pl.ANY),                            # embedding (HBM)
            pl.BlockSpec((l_all, dpad, dpad), lambda i, tok: (0, 0, 0)),  # weight slab
            pl.BlockSpec((l_all, 1, dpad), lambda i, tok: (0, 0, 0)),     # bias slab
        ],
        out_specs=pl.BlockSpec((tail, dpad), lambda i, tok: (0, 0)),
        scratch_shapes=[pltpu.VMEM((n, dpad), jnp.float32),
                        pltpu.SemaphoreType.DMA((n,))],
    )
    return pl.pallas_call(
        kernel,
        grid_spec=grid_spec,
        out_shape=jax.ShapeDtypeStruct((tail, dpad), jnp.float32),
        compiler_params=pltpu.CompilerParams(dimension_semantics=("arbitrary",)),
    )(tokens, emb_pad, w_slab, b_slab)


# --------------------------- params & packing ---------------------------------

def init_params(key, corpus_num, embedding_num, hidden_num, class_num, n_layers):
    ks = jax.random.split(key, 16)
    ki = iter(ks)

    def lin(k, din, dout):
        scale = 1.0 / jnp.sqrt(jnp.float32(din))
        return jax.random.uniform(k, (din, dout), jnp.float32, -scale, scale)

    def bias(k, d):
        return jax.random.uniform(k, (d,), jnp.float32, -0.1, 0.1)

    params = {}
    params["embedding"] = jax.random.normal(
        next(ki), (corpus_num, embedding_num), jnp.float32) * 0.1
    params["start_w"] = lin(next(ki), embedding_num, embedding_num)
    params["start_b"] = bias(next(ki), embedding_num)
    params["layer_w"] = [lin(next(ki), embedding_num, embedding_num)
                         for _ in range(n_layers)]
    params["layer_b"] = [bias(next(ki), embedding_num) for _ in range(n_layers)]
    params["end_w"] = lin(next(ki), embedding_num, hidden_num)
    params["end_b"] = bias(next(ki), hidden_num)
    params["fc_w"] = lin(next(ki), hidden_num, class_num)
    params["fc_b"] = bias(next(ki), class_num)
    return params


def pack_params(params, n_layers, class_num):
    """One-time re-layout for the fused kernel (outside the forward path)."""
    emb = params["embedding"].shape[1]
    hid = params["end_w"].shape[1]
    dpad = 128 * max(1, -(-max(emb, hid, class_num) // 128))   # lane-dense width
    n_gcn = n_layers + 1                                       # start + hidden
    l_all = n_gcn + 2                                          # + end_gcn + fc

    w_slab = np.zeros((l_all, dpad, dpad), np.float32)
    b_slab = np.zeros((l_all, 1, dpad), np.float32)
    gcn_ws = [params["start_w"], *params["layer_w"]]
    gcn_bs = [params["start_b"], *params["layer_b"]]
    for l in range(n_gcn):
        w_slab[l, :emb, :emb] = np.asarray(gcn_ws[l])
        b_slab[l, 0, :emb] = np.asarray(gcn_bs[l])
    w_slab[n_gcn, :emb, :hid] = np.asarray(params["end_w"])
    b_slab[n_gcn, 0, :hid] = np.asarray(params["end_b"])
    w_slab[n_gcn + 1, :hid, :class_num] = np.asarray(params["fc_w"])
    b_slab[n_gcn + 1, 0, :class_num] = np.asarray(params["fc_b"])

    emb_pad = np.zeros((params["embedding"].shape[0], dpad), np.float32)
    emb_pad[:, :emb] = np.asarray(params["embedding"])

    return {"emb_pad": jnp.asarray(emb_pad),
            "w_slab": jnp.asarray(w_slab),
            "b_slab": jnp.asarray(b_slab)}


# ------------------------------ Model forward ----------------------------------

def textgcn_forward(packed, batch_datas, batch_tags=None, *, n_layers, class_num):
    tokens = batch_datas[-1, :].astype(jnp.int32)          # matches batch_datas[-1, :]
    out_tail = textgcn_fused(tokens, packed["emb_pad"], packed["w_slab"],
                             packed["b_slab"], n_layers=n_layers)   # [TAIL, DPAD]

    pre = out_tail[-1, :class_num]                         # fc(out[-1, :])
    pred = jnp.argmax(pre, axis=-1).reshape(-1)            # self.pre

    loss = None
    if batch_tags is not None:
        # CrossEntropyLoss on the single-row logits (tiny plain-JAX epilogue).
        logits = pre.reshape(1, -1)
        tags = batch_tags.reshape(-1)
        logz = jax.nn.logsumexp(logits, axis=-1)
        nll = logz - jnp.take_along_axis(logits, tags[:, None], axis=-1)[:, 0]
        loss = jnp.mean(nll)
    return pre, pred, loss


# --------------------------- pure-numpy reference ------------------------------

def reference_logits(params, tokens, n_layers):
    tokens = np.asarray(tokens)
    n = tokens.shape[0]
    x = np.asarray(params["embedding"], np.float64)[tokens]

    def prop(w):
        A = np.eye(n)
        for i in range(n - 1):
            A[i + 1, i] = w                                 # edge i -> i+1
        deg = A.sum(axis=1)                                 # target-side degree
        dinv = 1.0 / np.sqrt(deg)
        return dinv[:, None] * A * dinv[None, :]

    ws = _edge_weights(n_layers)
    gcn_ws = [params["start_w"], *params["layer_w"]]
    gcn_bs = [params["start_b"], *params["layer_b"]]
    h = x
    for W, b, w in zip(gcn_ws, gcn_bs, ws[:-1]):
        h = np.maximum(prop(w) @ (h @ np.asarray(W, np.float64))
                       + np.asarray(b, np.float64), 0.0)
    h = prop(ws[-1]) @ (h @ np.asarray(params["end_w"], np.float64)) \
        + np.asarray(params["end_b"], np.float64)
    return h[-1] @ np.asarray(params["fc_w"], np.float64) + np.asarray(params["fc_b"], np.float64)


# ---------------------------------- main ---------------------------------------

if __name__ == "__main__":
    corpus_num = 50
    embedding_num = 32
    hidden_num = 32
    class_num = 4
    n_layers = 4
    batch = 2
    seq = 8

    key = jax.random.PRNGKey(0)
    k_param, k_data, k_tag = jax.random.split(key, 3)

    params = init_params(k_param, corpus_num, embedding_num, hidden_num,
                         class_num, n_layers)
    packed = pack_params(params, n_layers=n_layers, class_num=class_num)

    batch_datas = jax.random.randint(k_data, (batch, seq), 0, corpus_num,
                                     dtype=jnp.int32)
    batch_tags = jax.random.randint(k_tag, (1,), 0, class_num, dtype=jnp.int32)

    fwd = jax.jit(functools.partial(textgcn_forward, n_layers=n_layers,
                                    class_num=class_num))
    logits, pred, loss = fwd(packed, batch_datas, batch_tags)
    jax.block_until_ready((logits, pred, loss))

    ref = reference_logits(params, np.asarray(batch_datas)[-1, :], n_layers)
    np.testing.assert_allclose(np.asarray(logits), ref, rtol=1e-3, atol=1e-4)
    print("KERNEL_OK")
</pallas_src>

<mosaic_0001>
module attributes {stable_mosaic.version = 11 : i64} {
  func.func @_textgcn_kernel(%arg0: i32, %arg1: memref<8xi32, #tpu.memory_space<smem>>, %arg2: memref<50x128xf32, #tpu.memory_space<any>>, %arg3: memref<7x128x128xf32, #tpu.memory_space<vmem>>, %arg4: memref<7x1x128xf32, #tpu.memory_space<vmem>>, %arg5: memref<8x128xf32, #tpu.memory_space<vmem>>, %arg6: memref<8x128xf32, #tpu.memory_space<vmem>>, %arg7: memref<8x!tpu.dma_semaphore, #tpu.memory_space<semaphore_mem>>) attributes {dimension_semantics = [#tpu.dimension_semantics<arbitrary>], iteration_bounds = array<i64: 1>, scalar_prefetch = 1 : i64, scratch_operands = 2 : i64, tpu.core_type = #tpu.core_type<tc>, window_params = [{}, {pipeline_mode = #tpu.pipeline_mode<synchronous>, transform_indices = @transform_1, window_bounds = array<i64: 7, 128, 128>}, {pipeline_mode = #tpu.pipeline_mode<synchronous>, transform_indices = @transform_2, window_bounds = array<i64: 7, 1, 128>}, {pipeline_mode = #tpu.pipeline_mode<synchronous>, transform_indices = @transform_3, window_bounds = array<i64: 8, 128>}]} {
    %c0 = arith.constant 0 : index
    %0 = memref.load %arg1[%c0] : memref<8xi32, #tpu.memory_space<smem>>
    %c0_i32 = arith.constant 0 : i32
    %c0_i32_0 = arith.constant 0 : i32
    %1 = tpu.memref_slice %arg2[%0, %c0_i32_0] : memref<50x128xf32, #tpu.memory_space<any>> -> memref<1x128xf32, #tpu.memory_space<any>>
    %c0_i32_1 = arith.constant 0 : i32
    %c0_i32_2 = arith.constant 0 : i32
    %2 = tpu.memref_slice %arg6[%c0_i32_1, %c0_i32_2] : memref<8x128xf32, #tpu.memory_space<vmem>> -> memref<1x128xf32, #tpu.memory_space<vmem>>
    %3 = tpu.memref_slice %arg7[%c0_i32] : memref<8x!tpu.dma_semaphore, #tpu.memory_space<semaphore_mem>> -> memref<1x!tpu.dma_semaphore, #tpu.memory_space<semaphore_mem>>
    %4 = tpu.memref_squeeze %3 : memref<1x!tpu.dma_semaphore, #tpu.memory_space<semaphore_mem>> -> memref<!tpu.dma_semaphore, #tpu.memory_space<semaphore_mem>>
    tpu.enqueue_dma source(%1 : memref<1x128xf32, #tpu.memory_space<any>>) target(%2 : memref<1x128xf32, #tpu.memory_space<vmem>>) target_semaphore(%4 : memref<!tpu.dma_semaphore, #tpu.memory_space<semaphore_mem>>)
    %c1 = arith.constant 1 : index
    %5 = memref.load %arg1[%c1] : memref<8xi32, #tpu.memory_space<smem>>
    %c1_i32 = arith.constant 1 : i32
    %c0_i32_3 = arith.constant 0 : i32
    %6 = tpu.memref_slice %arg2[%5, %c0_i32_3] : memref<50x128xf32, #tpu.memory_space<any>> -> memref<1x128xf32, #tpu.memory_space<any>>
    %c1_i32_4 = arith.constant 1 : i32
    %c0_i32_5 = arith.constant 0 : i32
    %7 = tpu.memref_slice %arg6[%c1_i32_4, %c0_i32_5] : memref<8x128xf32, #tpu.memory_space<vmem>> -> memref<1x128xf32, #tpu.memory_space<vmem>>
    %8 = tpu.memref_slice %arg7[%c1_i32] : memref<8x!tpu.dma_semaphore, #tpu.memory_space<semaphore_mem>> -> memref<1x!tpu.dma_semaphore, #tpu.memory_space<semaphore_mem>>
    %9 = tpu.memref_squeeze %8 : memref<1x!tpu.dma_semaphore, #tpu.memory_space<semaphore_mem>> -> memref<!tpu.dma_semaphore, #tpu.memory_space<semaphore_mem>>
    tpu.enqueue_dma source(%6 : memref<1x128xf32, #tpu.memory_space<any>>) target(%7 : memref<1x128xf32, #tpu.memory_space<vmem>>) target_semaphore(%9 : memref<!tpu.dma_semaphore, #tpu.memory_space<semaphore_mem>>)
    %c2 = arith.constant 2 : index
    %10 = memref.load %arg1[%c2] : memref<8xi32, #tpu.memory_space<smem>>
    %c2_i32 = arith.constant 2 : i32
    %c0_i32_6 = arith.constant 0 : i32
    %11 = tpu.memref_slice %arg2[%10, %c0_i32_6] : memref<50x128xf32, #tpu.memory_space<any>> -> memref<1x128xf32, #tpu.memory_space<any>>
    %c2_i32_7 = arith.constant 2 : i32
    %c0_i32_8 = arith.constant 0 : i32
    %12 = tpu.memref_slice %arg6[%c2_i32_7, %c0_i32_8] : memref<8x128xf32, #tpu.memory_space<vmem>> -> memref<1x128xf32, #tpu.memory_space<vmem>>
    %13 = tpu.memref_slice %arg7[%c2_i32] : memref<8x!tpu.dma_semaphore, #tpu.memory_space<semaphore_mem>> -> memref<1x!tpu.dma_semaphore, #tpu.memory_space<semaphore_mem>>
    %14 = tpu.memref_squeeze %13 : memref<1x!tpu.dma_semaphore, #tpu.memory_space<semaphore_mem>> -> memref<!tpu.dma_semaphore, #tpu.memory_space<semaphore_mem>>
    tpu.enqueue_dma source(%11 : memref<1x128xf32, #tpu.memory_space<any>>) target(%12 : memref<1x128xf32, #tpu.memory_space<vmem>>) target_semaphore(%14 : memref<!tpu.dma_semaphore, #tpu.memory_space<semaphore_mem>>)
    %c3 = arith.constant 3 : index
    %15 = memref.load %arg1[%c3] : memref<8xi32, #tpu.memory_space<smem>>
    %c3_i32 = arith.constant 3 : i32
    %c0_i32_9 = arith.constant 0 : i32
    %16 = tpu.memref_slice %arg2[%15, %c0_i32_9] : memref<50x128xf32, #tpu.memory_space<any>> -> memref<1x128xf32, #tpu.memory_space<any>>
    %c3_i32_10 = arith.constant 3 : i32
    %c0_i32_11 = arith.constant 0 : i32
    %17 = tpu.memref_slice %arg6[%c3_i32_10, %c0_i32_11] : memref<8x128xf32, #tpu.memory_space<vmem>> -> memref<1x128xf32, #tpu.memory_space<vmem>>
    %18 = tpu.memref_slice %arg7[%c3_i32] : memref<8x!tpu.dma_semaphore, #tpu.memory_space<semaphore_mem>> -> memref<1x!tpu.dma_semaphore, #tpu.memory_space<semaphore_mem>>
    %19 = tpu.memref_squeeze %18 : memref<1x!tpu.dma_semaphore, #tpu.memory_space<semaphore_mem>> -> memref<!tpu.dma_semaphore, #tpu.memory_space<semaphore_mem>>
    tpu.enqueue_dma source(%16 : memref<1x128xf32, #tpu.memory_space<any>>) target(%17 : memref<1x128xf32, #tpu.memory_space<vmem>>) target_semaphore(%19 : memref<!tpu.dma_semaphore, #tpu.memory_space<semaphore_mem>>)
    %c4 = arith.constant 4 : index
    %20 = memref.load %arg1[%c4] : memref<8xi32, #tpu.memory_space<smem>>
    %c4_i32 = arith.constant 4 : i32
    %c0_i32_12 = arith.constant 0 : i32
    %21 = tpu.memref_slice %arg2[%20, %c0_i32_12] : memref<50x128xf32, #tpu.memory_space<any>> -> memref<1x128xf32, #tpu.memory_space<any>>
    %c4_i32_13 = arith.constant 4 : i32
    %c0_i32_14 = arith.constant 0 : i32
    %22 = tpu.memref_slice %arg6[%c4_i32_13, %c0_i32_14] : memref<8x128xf32, #tpu.memory_space<vmem>> -> memref<1x128xf32, #tpu.memory_space<vmem>>
    %23 = tpu.memref_slice %arg7[%c4_i32] : memref<8x!tpu.dma_semaphore, #tpu.memory_space<semaphore_mem>> -> memref<1x!tpu.dma_semaphore, #tpu.memory_space<semaphore_mem>>
    %24 = tpu.memref_squeeze %23 : memref<1x!tpu.dma_semaphore, #tpu.memory_space<semaphore_mem>> -> memref<!tpu.dma_semaphore, #tpu.memory_space<semaphore_mem>>
    tpu.enqueue_dma source(%21 : memref<1x128xf32, #tpu.memory_space<any>>) target(%22 : memref<1x128xf32, #tpu.memory_space<vmem>>) target_semaphore(%24 : memref<!tpu.dma_semaphore, #tpu.memory_space<semaphore_mem>>)
    %c5 = arith.constant 5 : index
    %25 = memref.load %arg1[%c5] : memref<8xi32, #tpu.memory_space<smem>>
    %c5_i32 = arith.constant 5 : i32
    %c0_i32_15 = arith.constant 0 : i32
    %26 = tpu.memref_slice %arg2[%25, %c0_i32_15] : memref<50x128xf32, #tpu.memory_space<any>> -> memref<1x128xf32, #tpu.memory_space<any>>
    %c5_i32_16 = arith.constant 5 : i32
    %c0_i32_17 = arith.constant 0 : i32
    %27 = tpu.memref_slice %arg6[%c5_i32_16, %c0_i32_17] : memref<8x128xf32, #tpu.memory_space<vmem>> -> memref<1x128xf32, #tpu.memory_space<vmem>>
    %28 = tpu.memref_slice %arg7[%c5_i32] : memref<8x!tpu.dma_semaphore, #tpu.memory_space<semaphore_mem>> -> memref<1x!tpu.dma_semaphore, #tpu.memory_space<semaphore_mem>>
    %29 = tpu.memref_squeeze %28 : memref<1x!tpu.dma_semaphore, #tpu.memory_space<semaphore_mem>> -> memref<!tpu.dma_semaphore, #tpu.memory_space<semaphore_mem>>
    tpu.enqueue_dma source(%26 : memref<1x128xf32, #tpu.memory_space<any>>) target(%27 : memref<1x128xf32, #tpu.memory_space<vmem>>) target_semaphore(%29 : memref<!tpu.dma_semaphore, #tpu.memory_space<semaphore_mem>>)
    %c6 = arith.constant 6 : index
    %30 = memref.load %arg1[%c6] : memref<8xi32, #tpu.memory_space<smem>>
    %c6_i32 = arith.constant 6 : i32
    %c0_i32_18 = arith.constant 0 : i32
    %31 = tpu.memref_slice %arg2[%30, %c0_i32_18] : memref<50x128xf32, #tpu.memory_space<any>> -> memref<1x128xf32, #tpu.memory_space<any>>
    %c6_i32_19 = arith.constant 6 : i32
    %c0_i32_20 = arith.constant 0 : i32
    %32 = tpu.memref_slice %arg6[%c6_i32_19, %c0_i32_20] : memref<8x128xf32, #tpu.memory_space<vmem>> -> memref<1x128xf32, #tpu.memory_space<vmem>>
    %33 = tpu.memref_slice %arg7[%c6_i32] : memref<8x!tpu.dma_semaphore, #tpu.memory_space<semaphore_mem>> -> memref<1x!tpu.dma_semaphore, #tpu.memory_space<semaphore_mem>>
    %34 = tpu.memref_squeeze %33 : memref<1x!tpu.dma_semaphore, #tpu.memory_space<semaphore_mem>> -> memref<!tpu.dma_semaphore, #tpu.memory_space<semaphore_mem>>
    tpu.enqueue_dma source(%31 : memref<1x128xf32, #tpu.memory_space<any>>) target(%32 : memref<1x128xf32, #tpu.memory_space<vmem>>) target_semaphore(%34 : memref<!tpu.dma_semaphore, #tpu.memory_space<semaphore_mem>>)
    %c7 = arith.constant 7 : index
    %35 = memref.load %arg1[%c7] : memref<8xi32, #tpu.memory_space<smem>>
    %c7_i32 = arith.constant 7 : i32
    %c0_i32_21 = arith.constant 0 : i32
    %36 = tpu.memref_slice %arg2[%35, %c0_i32_21] : memref<50x128xf32, #tpu.memory_space<any>> -> memref<1x128xf32, #tpu.memory_space<any>>
    %c7_i32_22 = arith.constant 7 : i32
    %c0_i32_23 = arith.constant 0 : i32
    %37 = tpu.memref_slice %arg6[%c7_i32_22, %c0_i32_23] : memref<8x128xf32, #tpu.memory_space<vmem>> -> memref<1x128xf32, #tpu.memory_space<vmem>>
    %38 = tpu.memref_slice %arg7[%c7_i32] : memref<8x!tpu.dma_semaphore, #tpu.memory_space<semaphore_mem>> -> memref<1x!tpu.dma_semaphore, #tpu.memory_space<semaphore_mem>>
    %39 = tpu.memref_squeeze %38 : memref<1x!tpu.dma_semaphore, #tpu.memory_space<semaphore_mem>> -> memref<!tpu.dma_semaphore, #tpu.memory_space<semaphore_mem>>
    tpu.enqueue_dma source(%36 : memref<1x128xf32, #tpu.memory_space<any>>) target(%37 : memref<1x128xf32, #tpu.memory_space<vmem>>) target_semaphore(%39 : memref<!tpu.dma_semaphore, #tpu.memory_space<semaphore_mem>>)
    %c0_i32_24 = arith.constant 0 : i32
    %c0_i32_25 = arith.constant 0 : i32
    %40 = tpu.memref_slice %arg2[%0, %c0_i32_25] : memref<50x128xf32, #tpu.memory_space<any>> -> memref<1x128xf32, #tpu.memory_space<any>>
    %c0_i32_26 = arith.constant 0 : i32
    %c0_i32_27 = arith.constant 0 : i32
    %41 = tpu.memref_slice %arg6[%c0_i32_26, %c0_i32_27] : memref<8x128xf32, #tpu.memory_space<vmem>> -> memref<1x128xf32, #tpu.memory_space<vmem>>
    %42 = tpu.memref_slice %arg7[%c0_i32_24] : memref<8x!tpu.dma_semaphore, #tpu.memory_space<semaphore_mem>> -> memref<1x!tpu.dma_semaphore, #tpu.memory_space<semaphore_mem>>
    %43 = tpu.memref_squeeze %42 : memref<1x!tpu.dma_semaphore, #tpu.memory_space<semaphore_mem>> -> memref<!tpu.dma_semaphore, #tpu.memory_space<semaphore_mem>>
    tpu.wait_dma2 semaphore(%43 : memref<!tpu.dma_semaphore, #tpu.memory_space<semaphore_mem>>) src(%40 : memref<1x128xf32, #tpu.memory_space<any>>) dst(%41 : memref<1x128xf32, #tpu.memory_space<vmem>>)
    %c1_i32_28 = arith.constant 1 : i32
    %c0_i32_29 = arith.constant 0 : i32
    %44 = tpu.memref_slice %arg2[%5, %c0_i32_29] : memref<50x128xf32, #tpu.memory_space<any>> -> memref<1x128xf32, #tpu.memory_space<any>>
    %c1_i32_30 = arith.constant 1 : i32
    %c0_i32_31 = arith.constant 0 : i32
    %45 = tpu.memref_slice %arg6[%c1_i32_30, %c0_i32_31] : memref<8x128xf32, #tpu.memory_space<vmem>> -> memref<1x128xf32, #tpu.memory_space<vmem>>
    %46 = tpu.memref_slice %arg7[%c1_i32_28] : memref<8x!tpu.dma_semaphore, #tpu.memory_space<semaphore_mem>> -> memref<1x!tpu.dma_semaphore, #tpu.memory_space<semaphore_mem>>
    %47 = tpu.memref_squeeze %46 : memref<1x!tpu.dma_semaphore, #tpu.memory_space<semaphore_mem>> -> memref<!tpu.dma_semaphore, #tpu.memory_space<semaphore_mem>>
    tpu.wait_dma2 semaphore(%47 : memref<!tpu.dma_semaphore, #tpu.memory_space<semaphore_mem>>) src(%44 : memref<1x128xf32, #tpu.memory_space<any>>) dst(%45 : memref<1x128xf32, #tpu.memory_space<vmem>>)
    %c2_i32_32 = arith.constant 2 : i32
    %c0_i32_33 = arith.constant 0 : i32
    %48 = tpu.memref_slice %arg2[%10, %c0_i32_33] : memref<50x128xf32, #tpu.memory_space<any>> -> memref<1x128xf32, #tpu.memory_space<any>>
    %c2_i32_34 = arith.constant 2 : i32
    %c0_i32_35 = arith.constant 0 : i32
    %49 = tpu.memref_slice %arg6[%c2_i32_34, %c0_i32_35] : memref<8x128xf32, #tpu.memory_space<vmem>> -> memref<1x128xf32, #tpu.memory_space<vmem>>
    %50 = tpu.memref_slice %arg7[%c2_i32_32] : memref<8x!tpu.dma_semaphore, #tpu.memory_space<semaphore_mem>> -> memref<1x!tpu.dma_semaphore, #tpu.memory_space<semaphore_mem>>
    %51 = tpu.memref_squeeze %50 : memref<1x!tpu.dma_semaphore, #tpu.memory_space<semaphore_mem>> -> memref<!tpu.dma_semaphore, #tpu.memory_space<semaphore_mem>>
    tpu.wait_dma2 semaphore(%51 : memref<!tpu.dma_semaphore, #tpu.memory_space<semaphore_mem>>) src(%48 : memref<1x128xf32, #tpu.memory_space<any>>) dst(%49 : memref<1x128xf32, #tpu.memory_space<vmem>>)
    %c3_i32_36 = arith.constant 3 : i32
    %c0_i32_37 = arith.constant 0 : i32
    %52 = tpu.memref_slice %arg2[%15, %c0_i32_37] : memref<50x128xf32, #tpu.memory_space<any>> -> memref<1x128xf32, #tpu.memory_space<any>>
    %c3_i32_38 = arith.constant 3 : i32
    %c0_i32_39 = arith.constant 0 : i32
    %53 = tpu.memref_slice %arg6[%c3_i32_38, %c0_i32_39] : memref<8x128xf32, #tpu.memory_space<vmem>> -> memref<1x128xf32, #tpu.memory_space<vmem>>
    %54 = tpu.memref_slice %arg7[%c3_i32_36] : memref<8x!tpu.dma_semaphore, #tpu.memory_space<semaphore_mem>> -> memref<1x!tpu.dma_semaphore, #tpu.memory_space<semaphore_mem>>
    %55 = tpu.memref_squeeze %54 : memref<1x!tpu.dma_semaphore, #tpu.memory_space<semaphore_mem>> -> memref<!tpu.dma_semaphore, #tpu.memory_space<semaphore_mem>>
    tpu.wait_dma2 semaphore(%55 : memref<!tpu.dma_semaphore, #tpu.memory_space<semaphore_mem>>) src(%52 : memref<1x128xf32, #tpu.memory_space<any>>) dst(%53 : memref<1x128xf32, #tpu.memory_space<vmem>>)
    %c4_i32_40 = arith.constant 4 : i32
    %c0_i32_41 = arith.constant 0 : i32
    %56 = tpu.memref_slice %arg2[%20, %c0_i32_41] : memref<50x128xf32, #tpu.memory_space<any>> -> memref<1x128xf32, #tpu.memory_space<any>>
    %c4_i32_42 = arith.constant 4 : i32
    %c0_i32_43 = arith.constant 0 : i32
    %57 = tpu.memref_slice %arg6[%c4_i32_42, %c0_i32_43] : memref<8x128xf32, #tpu.memory_space<vmem>> -> memref<1x128xf32, #tpu.memory_space<vmem>>
    %58 = tpu.memref_slice %arg7[%c4_i32_40] : memref<8x!tpu.dma_semaphore, #tpu.memory_space<semaphore_mem>> -> memref<1x!tpu.dma_semaphore, #tpu.memory_space<semaphore_mem>>
    %59 = tpu.memref_squeeze %58 : memref<1x!tpu.dma_semaphore, #tpu.memory_space<semaphore_mem>> -> memref<!tpu.dma_semaphore, #tpu.memory_space<semaphore_mem>>
    tpu.wait_dma2 semaphore(%59 : memref<!tpu.dma_semaphore, #tpu.memory_space<semaphore_mem>>) src(%56 : memref<1x128xf32, #tpu.memory_space<any>>) dst(%57 : memref<1x128xf32, #tpu.memory_space<vmem>>)
    %c5_i32_44 = arith.constant 5 : i32
    %c0_i32_45 = arith.constant 0 : i32
    %60 = tpu.memref_slice %arg2[%25, %c0_i32_45] : memref<50x128xf32, #tpu.memory_space<any>> -> memref<1x128xf32, #tpu.memory_space<any>>
    %c5_i32_46 = arith.constant 5 : i32
    %c0_i32_47 = arith.constant 0 : i32
    %61 = tpu.memref_slice %arg6[%c5_i32_46, %c0_i32_47] : memref<8x128xf32, #tpu.memory_space<vmem>> -> memref<1x128xf32, #tpu.memory_space<vmem>>
    %62 = tpu.memref_slice %arg7[%c5_i32_44] : memref<8x!tpu.dma_semaphore, #tpu.memory_space<semaphore_mem>> -> memref<1x!tpu.dma_semaphore, #tpu.memory_space<semaphore_mem>>
    %63 = tpu.memref_squeeze %62 : memref<1x!tpu.dma_semaphore, #tpu.memory_space<semaphore_mem>> -> memref<!tpu.dma_semaphore, #tpu.memory_space<semaphore_mem>>
    tpu.wait_dma2 semaphore(%63 : memref<!tpu.dma_semaphore, #tpu.memory_space<semaphore_mem>>) src(%60 : memref<1x128xf32, #tpu.memory_space<any>>) dst(%61 : memref<1x128xf32, #tpu.memory_space<vmem>>)
    %c6_i32_48 = arith.constant 6 : i32
    %c0_i32_49 = arith.constant 0 : i32
    %64 = tpu.memref_slice %arg2[%30, %c0_i32_49] : memref<50x128xf32, #tpu.memory_space<any>> -> memref<1x128xf32, #tpu.memory_space<any>>
    %c6_i32_50 = arith.constant 6 : i32
    %c0_i32_51 = arith.constant 0 : i32
    %65 = tpu.memref_slice %arg6[%c6_i32_50, %c0_i32_51] : memref<8x128xf32, #tpu.memory_space<vmem>> -> memref<1x128xf32, #tpu.memory_space<vmem>>
    %66 = tpu.memref_slice %arg7[%c6_i32_48] : memref<8x!tpu.dma_semaphore, #tpu.memory_space<semaphore_mem>> -> memref<1x!tpu.dma_semaphore, #tpu.memory_space<semaphore_mem>>
    %67 = tpu.memref_squeeze %66 : memref<1x!tpu.dma_semaphore, #tpu.memory_space<semaphore_mem>> -> memref<!tpu.dma_semaphore, #tpu.memory_space<semaphore_mem>>
    tpu.wait_dma2 semaphore(%67 : memref<!tpu.dma_semaphore, #tpu.memory_space<semaphore_mem>>) src(%64 : memref<1x128xf32, #tpu.memory_space<any>>) dst(%65 : memref<1x128xf32, #tpu.memory_space<vmem>>)
    %c7_i32_52 = arith.constant 7 : i32
    %c0_i32_53 = arith.constant 0 : i32
    %68 = tpu.memref_slice %arg2[%35, %c0_i32_53] : memref<50x128xf32, #tpu.memory_space<any>> -> memref<1x128xf32, #tpu.memory_space<any>>
    %c7_i32_54 = arith.constant 7 : i32
    %c0_i32_55 = arith.constant 0 : i32
    %69 = tpu.memref_slice %arg6[%c7_i32_54, %c0_i32_55] : memref<8x128xf32, #tpu.memory_space<vmem>> -> memref<1x128xf32, #tpu.memory_space<vmem>>
    %70 = tpu.memref_slice %arg7[%c7_i32_52] : memref<8x!tpu.dma_semaphore, #tpu.memory_space<semaphore_mem>> -> memref<1x!tpu.dma_semaphore, #tpu.memory_space<semaphore_mem>>
    %71 = tpu.memref_squeeze %70 : memref<1x!tpu.dma_semaphore, #tpu.memory_space<semaphore_mem>> -> memref<!tpu.dma_semaphore, #tpu.memory_space<semaphore_mem>>
    tpu.wait_dma2 semaphore(%71 : memref<!tpu.dma_semaphore, #tpu.memory_space<semaphore_mem>>) src(%68 : memref<1x128xf32, #tpu.memory_space<any>>) dst(%69 : memref<1x128xf32, #tpu.memory_space<vmem>>)
    %c0_56 = arith.constant 0 : index
    %c0_57 = arith.constant 0 : index
    %72 = vector.load %arg6[%c0_56, %c0_57] : memref<8x128xf32, #tpu.memory_space<vmem>>, vector<8x128xf32>
    %73 = tpu.iota {dimensions = array<i32: 0>} : vector<8x128xi32>
    %c0_i32_58 = arith.constant 0 : i32
    %74 = vector.broadcast %c0_i32_58 : i32 to vector<8x128xi32>
    %75 = arith.cmpi eq, %73, %74 : vector<8x128xi32>
    %c1_i32_59 = arith.constant 1 : i32
    %76 = vector.broadcast %c1_i32_59 : i32 to vector<8x128xi32>
    %77 = arith.cmpi eq, %73, %76 : vector<8x128xi32>
    %c0_60 = arith.constant 0 : index
    %c0_61 = arith.constant 0 : index
    %c0_62 = arith.constant 0 : index
    %78 = vector.load %arg3[%c0_60, %c0_61, %c0_62] : memref<7x128x128xf32, #tpu.memory_space<vmem>>, vector<1x128x128xf32>
    %79 = vector.shape_cast %78 : vector<1x128x128xf32> to vector<128x128xf32>
    %cst = arith.constant dense<0.000000e+00> : vector<8x128xf32>
    %80 = tpu.matmul %72, %79, %cst {dimension_numbers = #tpu.dot_dimension_numbers<[1], [0], [0], [1], [0, 0, 1, 1], [], []>} : vector<8x128xf32>, vector<128x128xf32>, vector<8x128xf32> -> vector<8x128xf32>
    %cst_63 = arith.constant 1.000000e+00 : f32
    %cst_64 = arith.constant 5.000000e-01 : f32
    %81 = vector.broadcast %cst_63 : f32 to vector<8x128xf32>
    %82 = vector.broadcast %cst_64 : f32 to vector<8x128xf32>
    %83 = arith.select %75, %81, %82 : vector<8x128xi1>, vector<8x128xf32>
    %cst_65 = arith.constant 0.707106769 : f32
    %cst_66 = arith.constant 5.000000e-01 : f32
    %84 = vector.broadcast %cst_65 : f32 to vector<8x128xf32>
    %85 = vector.broadcast %cst_66 : f32 to vector<8x128xf32>
    %86 = arith.select %77, %84, %85 : vector<8x128xi1>, vector<8x128xf32>
    %cst_67 = arith.constant 0.000000e+00 : f32
    %87 = vector.broadcast %cst_67 : f32 to vector<8x128xf32>
    %88 = arith.select %75, %87, %86 : vector<8x128xi1>, vector<8x128xf32>
    %c1_i32_68 = arith.constant 1 : i32
    %89 = tpu.dynamic_rotate %80 by %c1_i32_68 dim 0 : vector<8x128xf32>, i32 -> vector<8x128xf32>
    %90 = arith.mulf %83, %80 : vector<8x128xf32>
    %91 = arith.mulf %88, %89 : vector<8x128xf32>
    %92 = arith.addf %90, %91 : vector<8x128xf32>
    %c0_69 = arith.constant 0 : index
    %c0_70 = arith.constant 0 : index
    %c0_71 = arith.constant 0 : index
    %93 = vector.load %arg4[%c0_69, %c0_70, %c0_71] : memref<7x1x128xf32, #tpu.memory_space<vmem>>, vector<1x1x128xf32>
    %94 = vector.shape_cast %93 : vector<1x1x128xf32> to vector<1x128xf32>
    %95 = vector.broadcast %94 : vector<1x128xf32> to vector<8x128xf32>
    %96 = arith.addf %92, %95 : vector<8x128xf32>
    %cst_72 = arith.constant 0.000000e+00 : f32
    %97 = vector.broadcast %cst_72 : f32 to vector<8x128xf32>
    %98 = arith.maximumf %96, %97 : vector<8x128xf32>
    %c1_73 = arith.constant 1 : index
    %c0_74 = arith.constant 0 : index
    %c0_75 = arith.constant 0 : index
    %99 = vector.load %arg3[%c1_73, %c0_74, %c0_75] : memref<7x128x128xf32, #tpu.memory_space<vmem>>, vector<1x128x128xf32>
    %100 = vector.shape_cast %99 : vector<1x128x128xf32> to vector<128x128xf32>
    %cst_76 = arith.constant dense<0.000000e+00> : vector<8x128xf32>
    %101 = tpu.matmul %98, %100, %cst_76 {dimension_numbers = #tpu.dot_dimension_numbers<[1], [0], [0], [1], [0, 0, 1, 1], [], []>} : vector<8x128xf32>, vector<128x128xf32>, vector<8x128xf32> -> vector<8x128xf32>
    %cst_77 = arith.constant 1.000000e+00 : f32
    %cst_78 = arith.constant 2.500000e-01 : f32
    %102 = vector.broadcast %cst_77 : f32 to vector<8x128xf32>
    %103 = vector.broadcast %cst_78 : f32 to vector<8x128xf32>
    %104 = arith.select %75, %102, %103 : vector<8x128xi1>, vector<8x128xf32>
    %cst_79 = arith.constant 1.500000e+00 : f32
    %cst_80 = arith.constant 7.500000e-01 : f32
    %105 = vector.broadcast %cst_79 : f32 to vector<8x128xf32>
    %106 = vector.broadcast %cst_80 : f32 to vector<8x128xf32>
    %107 = arith.select %77, %105, %106 : vector<8x128xi1>, vector<8x128xf32>
    %cst_81 = arith.constant 0.000000e+00 : f32
    %108 = vector.broadcast %cst_81 : f32 to vector<8x128xf32>
    %109 = arith.select %75, %108, %107 : vector<8x128xi1>, vector<8x128xf32>
    %c1_i32_82 = arith.constant 1 : i32
    %110 = tpu.dynamic_rotate %101 by %c1_i32_82 dim 0 : vector<8x128xf32>, i32 -> vector<8x128xf32>
    %111 = arith.mulf %104, %101 : vector<8x128xf32>
    %112 = arith.mulf %109, %110 : vector<8x128xf32>
    %113 = arith.addf %111, %112 : vector<8x128xf32>
    %c1_83 = arith.constant 1 : index
    %c0_84 = arith.constant 0 : index
    %c0_85 = arith.constant 0 : index
    %114 = vector.load %arg4[%c1_83, %c0_84, %c0_85] : memref<7x1x128xf32, #tpu.memory_space<vmem>>, vector<1x1x128xf32>
    %115 = vector.shape_cast %114 : vector<1x1x128xf32> to vector<1x128xf32>
    %116 = vector.broadcast %115 : vector<1x128xf32> to vector<8x128xf32>
    %117 = arith.addf %113, %116 : vector<8x128xf32>
    %cst_86 = arith.constant 0.000000e+00 : f32
    %118 = vector.broadcast %cst_86 : f32 to vector<8x128xf32>
    %119 = arith.maximumf %117, %118 : vector<8x128xf32>
    %c2_87 = arith.constant 2 : index
    %c0_88 = arith.constant 0 : index
    %c0_89 = arith.constant 0 : index
    %120 = vector.load %arg3[%c2_87, %c0_88, %c0_89] : memref<7x128x128xf32, #tpu.memory_space<vmem>>, vector<1x128x128xf32>
    %121 = vector.shape_cast %120 : vector<1x128x128xf32> to vector<128x128xf32>
    %cst_90 = arith.constant dense<0.000000e+00> : vector<8x128xf32>
    %122 = tpu.matmul %119, %121, %cst_90 {dimension_numbers = #tpu.dot_dimension_numbers<[1], [0], [0], [1], [0, 0, 1, 1], [], []>} : vector<8x128xf32>, vector<128x128xf32>, vector<8x128xf32> -> vector<8x128xf32>
    %cst_91 = arith.constant 1.000000e+00 : f32
    %cst_92 = arith.constant 2.000000e-01 : f32
    %123 = vector.broadcast %cst_91 : f32 to vector<8x128xf32>
    %124 = vector.broadcast %cst_92 : f32 to vector<8x128xf32>
    %125 = arith.select %75, %123, %124 : vector<8x128xi1>, vector<8x128xf32>
    %cst_93 = arith.constant 1.78885436 : f32
    %cst_94 = arith.constant 8.000000e-01 : f32
    %126 = vector.broadcast %cst_93 : f32 to vector<8x128xf32>
    %127 = vector.broadcast %cst_94 : f32 to vector<8x128xf32>
    %128 = arith.select %77, %126, %127 : vector<8x128xi1>, vector<8x128xf32>
    %cst_95 = arith.constant 0.000000e+00 : f32
    %129 = vector.broadcast %cst_95 : f32 to vector<8x128xf32>
    %130 = arith.select %75, %129, %128 : vector<8x128xi1>, vector<8x128xf32>
    %c1_i32_96 = arith.constant 1 : i32
    %131 = tpu.dynamic_rotate %122 by %c1_i32_96 dim 0 : vector<8x128xf32>, i32 -> vector<8x128xf32>
    %132 = arith.mulf %125, %122 : vector<8x128xf32>
    %133 = arith.mulf %130, %131 : vector<8x128xf32>
    %134 = arith.addf %132, %133 : vector<8x128xf32>
    %c2_97 = arith.constant 2 : index
    %c0_98 = arith.constant 0 : index
    %c0_99 = arith.constant 0 : index
    %135 = vector.load %arg4[%c2_97, %c0_98, %c0_99] : memref<7x1x128xf32, #tpu.memory_space<vmem>>, vector<1x1x128xf32>
    %136 = vector.shape_cast %135 : vector<1x1x128xf32> to vector<1x128xf32>
    %137 = vector.broadcast %136 : vector<1x128xf32> to vector<8x128xf32>
    %138 = arith.addf %134, %137 : vector<8x128xf32>
    %cst_100 = arith.constant 0.000000e+00 : f32
    %139 = vector.broadcast %cst_100 : f32 to vector<8x128xf32>
    %140 = arith.maximumf %138, %139 : vector<8x128xf32>
    %c3_101 = arith.constant 3 : index
    %c0_102 = arith.constant 0 : index
    %c0_103 = arith.constant 0 : index
    %141 = vector.load %arg3[%c3_101, %c0_102, %c0_103] : memref<7x128x128xf32, #tpu.memory_space<vmem>>, vector<1x128x128xf32>
    %142 = vector.shape_cast %141 : vector<1x128x128xf32> to vector<128x128xf32>
    %cst_104 = arith.constant dense<0.000000e+00> : vector<8x128xf32>
    %143 = tpu.matmul %140, %142, %cst_104 {dimension_numbers = #tpu.dot_dimension_numbers<[1], [0], [0], [1], [0, 0, 1, 1], [], []>} : vector<8x128xf32>, vector<128x128xf32>, vector<8x128xf32> -> vector<8x128xf32>
    %cst_105 = arith.constant 1.000000e+00 : f32
    %cst_106 = arith.constant 0.166666672 : f32
    %144 = vector.broadcast %cst_105 : f32 to vector<8x128xf32>
    %145 = vector.broadcast %cst_106 : f32 to vector<8x128xf32>
    %146 = arith.select %75, %144, %145 : vector<8x128xi1>, vector<8x128xf32>
    %cst_107 = arith.constant 2.04124141 : f32
    %cst_108 = arith.constant 0.833333313 : f32
    %147 = vector.broadcast %cst_107 : f32 to vector<8x128xf32>
    %148 = vector.broadcast %cst_108 : f32 to vector<8x128xf32>
    %149 = arith.select %77, %147, %148 : vector<8x128xi1>, vector<8x128xf32>
    %cst_109 = arith.constant 0.000000e+00 : f32
    %150 = vector.broadcast %cst_109 : f32 to vector<8x128xf32>
    %151 = arith.select %75, %150, %149 : vector<8x128xi1>, vector<8x128xf32>
    %c1_i32_110 = arith.constant 1 : i32
    %152 = tpu.dynamic_rotate %143 by %c1_i32_110 dim 0 : vector<8x128xf32>, i32 -> vector<8x128xf32>
    %153 = arith.mulf %146, %143 : vector<8x128xf32>
    %154 = arith.mulf %151, %152 : vector<8x128xf32>
    %155 = arith.addf %153, %154 : vector<8x128xf32>
    %c3_111 = arith.constant 3 : index
    %c0_112 = arith.constant 0 : index
    %c0_113 = arith.constant 0 : index
    %156 = vector.load %arg4[%c3_111, %c0_112, %c0_113] : memref<7x1x128xf32, #tpu.memory_space<vmem>>, vector<1x1x128xf32>
    %157 = vector.shape_cast %156 : vector<1x1x128xf32> to vector<1x128xf32>
    %158 = vector.broadcast %157 : vector<1x128xf32> to vector<8x128xf32>
    %159 = arith.addf %155, %158 : vector<8x128xf32>
    %cst_114 = arith.constant 0.000000e+00 : f32
    %160 = vector.broadcast %cst_114 : f32 to vector<8x128xf32>
    %161 = arith.maximumf %159, %160 : vector<8x128xf32>
    %c4_115 = arith.constant 4 : index
    %c0_116 = arith.constant 0 : index
    %c0_117 = arith.constant 0 : index
    %162 = vector.load %arg3[%c4_115, %c0_116, %c0_117] : memref<7x128x128xf32, #tpu.memory_space<vmem>>, vector<1x128x128xf32>
    %163 = vector.shape_cast %162 : vector<1x128x128xf32> to vector<128x128xf32>
    %cst_118 = arith.constant dense<0.000000e+00> : vector<8x128xf32>
    %164 = tpu.matmul %161, %163, %cst_118 {dimension_numbers = #tpu.dot_dimension_numbers<[1], [0], [0], [1], [0, 0, 1, 1], [], []>} : vector<8x128xf32>, vector<128x128xf32>, vector<8x128xf32> -> vector<8x128xf32>
    %cst_119 = arith.constant 1.000000e+00 : f32
    %cst_120 = arith.constant 0.142857149 : f32
    %165 = vector.broadcast %cst_119 : f32 to vector<8x128xf32>
    %166 = vector.broadcast %cst_120 : f32 to vector<8x128xf32>
    %167 = arith.select %75, %165, %166 : vector<8x128xi1>, vector<8x128xf32>
    %cst_121 = arith.constant 2.26778674 : f32
    %cst_122 = arith.constant 0.857142865 : f32
    %168 = vector.broadcast %cst_121 : f32 to vector<8x128xf32>
    %169 = vector.broadcast %cst_122 : f32 to vector<8x128xf32>
    %170 = arith.select %77, %168, %169 : vector<8x128xi1>, vector<8x128xf32>
    %cst_123 = arith.constant 0.000000e+00 : f32
    %171 = vector.broadcast %cst_123 : f32 to vector<8x128xf32>
    %172 = arith.select %75, %171, %170 : vector<8x128xi1>, vector<8x128xf32>
    %c1_i32_124 = arith.constant 1 : i32
    %173 = tpu.dynamic_rotate %164 by %c1_i32_124 dim 0 : vector<8x128xf32>, i32 -> vector<8x128xf32>
    %174 = arith.mulf %167, %164 : vector<8x128xf32>
    %175 = arith.mulf %172, %173 : vector<8x128xf32>
    %176 = arith.addf %174, %175 : vector<8x128xf32>
    %c4_125 = arith.constant 4 : index
    %c0_126 = arith.constant 0 : index
    %c0_127 = arith.constant 0 : index
    %177 = vector.load %arg4[%c4_125, %c0_126, %c0_127] : memref<7x1x128xf32, #tpu.memory_space<vmem>>, vector<1x1x128xf32>
    %178 = vector.shape_cast %177 : vector<1x1x128xf32> to vector<1x128xf32>
    %179 = vector.broadcast %178 : vector<1x128xf32> to vector<8x128xf32>
    %180 = arith.addf %176, %179 : vector<8x128xf32>
    %cst_128 = arith.constant 0.000000e+00 : f32
    %181 = vector.broadcast %cst_128 : f32 to vector<8x128xf32>
    %182 = arith.maximumf %180, %181 : vector<8x128xf32>
    %c5_129 = arith.constant 5 : index
    %c0_130 = arith.constant 0 : index
    %c0_131 = arith.constant 0 : index
    %183 = vector.load %arg3[%c5_129, %c0_130, %c0_131] : memref<7x128x128xf32, #tpu.memory_space<vmem>>, vector<1x128x128xf32>
    %184 = vector.shape_cast %183 : vector<1x128x128xf32> to vector<128x128xf32>
    %cst_132 = arith.constant dense<0.000000e+00> : vector<8x128xf32>
    %185 = tpu.matmul %182, %184, %cst_132 {dimension_numbers = #tpu.dot_dimension_numbers<[1], [0], [0], [1], [0, 0, 1, 1], [], []>} : vector<8x128xf32>, vector<128x128xf32>, vector<8x128xf32> -> vector<8x128xf32>
    %cst_133 = arith.constant 1.000000e+00 : f32
    %cst_134 = arith.constant 1.250000e-01 : f32
    %186 = vector.broadcast %cst_133 : f32 to vector<8x128xf32>
    %187 = vector.broadcast %cst_134 : f32 to vector<8x128xf32>
    %188 = arith.select %75, %186, %187 : vector<8x128xi1>, vector<8x128xf32>
    %cst_135 = arith.constant 2.47487378 : f32
    %cst_136 = arith.constant 8.750000e-01 : f32
    %189 = vector.broadcast %cst_135 : f32 to vector<8x128xf32>
    %190 = vector.broadcast %cst_136 : f32 to vector<8x128xf32>
    %191 = arith.select %77, %189, %190 : vector<8x128xi1>, vector<8x128xf32>
    %cst_137 = arith.constant 0.000000e+00 : f32
    %192 = vector.broadcast %cst_137 : f32 to vector<8x128xf32>
    %193 = arith.select %75, %192, %191 : vector<8x128xi1>, vector<8x128xf32>
    %c1_i32_138 = arith.constant 1 : i32
    %194 = tpu.dynamic_rotate %185 by %c1_i32_138 dim 0 : vector<8x128xf32>, i32 -> vector<8x128xf32>
    %195 = arith.mulf %188, %185 : vector<8x128xf32>
    %196 = arith.mulf %193, %194 : vector<8x128xf32>
    %197 = arith.addf %195, %196 : vector<8x128xf32>
    %c5_139 = arith.constant 5 : index
    %c0_140 = arith.constant 0 : index
    %c0_141 = arith.constant 0 : index
    %198 = vector.load %arg4[%c5_139, %c0_140, %c0_141] : memref<7x1x128xf32, #tpu.memory_space<vmem>>, vector<1x1x128xf32>
    %199 = vector.shape_cast %198 : vector<1x1x128xf32> to vector<1x128xf32>
    %200 = vector.broadcast %199 : vector<1x128xf32> to vector<8x128xf32>
    %201 = arith.addf %197, %200 : vector<8x128xf32>
    %c6_142 = arith.constant 6 : index
    %c0_143 = arith.constant 0 : index
    %c0_144 = arith.constant 0 : index
    %202 = vector.load %arg3[%c6_142, %c0_143, %c0_144] : memref<7x128x128xf32, #tpu.memory_space<vmem>>, vector<1x128x128xf32>
    %203 = vector.shape_cast %202 : vector<1x128x128xf32> to vector<128x128xf32>
    %cst_145 = arith.constant dense<0.000000e+00> : vector<8x128xf32>
    %204 = tpu.matmul %201, %203, %cst_145 {dimension_numbers = #tpu.dot_dimension_numbers<[1], [0], [0], [1], [0, 0, 1, 1], [], []>} : vector<8x128xf32>, vector<128x128xf32>, vector<8x128xf32> -> vector<8x128xf32>
    %c6_146 = arith.constant 6 : index
    %c0_147 = arith.constant 0 : index
    %c0_148 = arith.constant 0 : index
    %205 = vector.load %arg4[%c6_146, %c0_147, %c0_148] : memref<7x1x128xf32, #tpu.memory_space<vmem>>, vector<1x1x128xf32>
    %206 = vector.shape_cast %205 : vector<1x1x128xf32> to vector<1x128xf32>
    %207 = vector.broadcast %206 : vector<1x128xf32> to vector<8x128xf32>
    %208 = arith.addf %204, %207 : vector<8x128xf32>
    %c0_149 = arith.constant 0 : index
    %c0_150 = arith.constant 0 : index
    %209 = vector.load %arg5[%c0_149, %c0_150] : memref<8x128xf32, #tpu.memory_space<vmem>>, vector<8x128xf32>
    tpu.vector_store %arg5[%c0_149, %c0_150], %208 {strides = array<i32>} : memref<8x128xf32, #tpu.memory_space<vmem>>, vector<8x128xf32>,
    return
  }
  func.func @transform_1(%arg0: i32, %arg1: memref<8xi32, #tpu.memory_space<smem>>) -> (i32, i32, i32) {
    %c0_i32 = arith.constant 0 : i32
    %c0_i32_0 = arith.constant 0 : i32
    %c0_i32_1 = arith.constant 0 : i32
    %c0_i32_2 = arith.constant 0 : i32
    return %c0_i32, %c0_i32_0, %c0_i32_1 : i32, i32, i32
  }
  func.func @transform_2(%arg0: i32, %arg1: memref<8xi32, #tpu.memory_space<smem>>) -> (i32, i32, i32) {
    %c0_i32 = arith.constant 0 : i32
    %c0_i32_0 = arith.constant 0 : i32
    %c0_i32_1 = arith.constant 0 : i32
    %c0_i32_2 = arith.constant 0 : i32
    return %c0_i32, %c0_i32_0, %c0_i32_1 : i32, i32, i32
  }
  func.func @transform_3(%arg0: i32, %arg1: memref<8xi32, #tpu.memory_space<smem>>) -> (i32, i32) {
    %c0_i32 = arith.constant 0 : i32
    %c0_i32_0 = arith.constant 0 : i32
    %c0_i32_1 = arith.constant 0 : i32
    return %c0_i32, %c0_i32_0 : i32, i32
  }
}

</mosaic_0001>

<bundles_post_ra>
// kernel: textgcn_forward.1
= control target key start
LH: loop header
LB: loop body
LE: loop exit
PB: predicated region body
PF: predicated region fallthrough
CT: control target
= control target key end

     0   :  { %s2145_s0 = inlined_call_operand.vmem [shape: s32[8], index: 0, kind: input, shape index: {}]   ;;  %s2146_s1 = inlined_call_operand.hbm [shape: f32[50,128], index: 1, kind: input, shape index: {}]   ;;  %s2147_s2 = inlined_call_operand.hbm [shape: f32[7,128,128], index: 2, kind: input, shape index: {}]   ;;  %s2148_s3 = inlined_call_operand.vmem [shape: f32[7,1,128], index: 3, kind: input, shape index: {}]   ;;  %s2149_s4 = inlined_call_operand.vmem [shape: f32[8,128], index: 4, kind: output, shape index: {}]  }
   0x1   :  { %s9_s17 = sshll.u32 %s2145_s0, 4  ;;  %s10_s17 = int_to_ptr.vmem [resolvable:$true] %s9_s17 }
   0x2   :  { %s1568_s18 = scalar_lea.vmem %s10_s17, 16  ;;  %p1573_p1 = scmp.lt.s32.totalorder %s10_s17, %s10_s17 }
   0x3   :  { %p1569_p0 = scmp.ne.s32.totalorder %s10_s17, %s1568_s18  ;;  %p1574_p2 = scmp.lt.s32.totalorder %s1568_s18, %s1568_s18 }
   0x5   :  { %p1575_p3 = por %p1574_p2, %p1573_p1 }
   0x7   :  { %p1576_p4 = pnand %p1575_p3, %p1569_p0 }
   0x9   :  { %1579 = shalt.err (!%p1576_p4)  }
   0xa   :  { %s1814_s19 = smov [#allocation5]  }
   0xb   :  { %12 = dma.vmem_to_smem %s10_s17, 16, %s1814_s19, [#allocation4] }
   0xc   :  { %1794 = dma.done.wait [#allocation4], 16 }
   0xd   :  { %1795 = vsyncadd [#allocation4], 4294967280 }
   0xe   :  { %14 = sfence }
   0xf   :  { %15 = vsyncpa [#allocation7], 0  ;;  %s1815_s20 = smov [#allocation6]   ;;  %s1580_s0 = scalar_lea.hbm %s2147_s2, 14336 }
  0x10   :  { %s21_s21 = sshll.u32 %s1815_s20, 4  ;;  %p1581_p5 = scmp.ne.s32.totalorder %s2147_s2, %s1580_s0  ;;  %s22_s21 = int_to_ptr.vmem [resolvable:$true] %s21_s21 }
  0x11   :  { %p1584_p6 = scmp.lt.u32.totalorder %s1580_s0, %s2147_s2 }
  0x13   :  { %p1586_p7 = pnand %p1584_p6, %p1581_p5 }
  0x15   :  { %1589 = shalt.err (!%p1586_p7)
}
  0x16   :  { %s1590_s28 = scalar_lea.vmem %s22_s21, 14336  ;;  %p1595_p9 = scmp.lt.s32.totalorder %s22_s21, %s22_s21 }
  0x17   :  { %p1591_p8 = scmp.ne.s32.totalorder %s22_s21, %s1590_s28  ;;  %p1596_p10 = scmp.lt.s32.totalorder %s1590_s28, %s1590_s28 }
  0x19   :  { %p1597_p11 = por %p1596_p10, %p1595_p9 }
  0x1b   :  { %p1598_p12 = pnand %p1597_p11, %p1591_p8 }
  0x1d   :  { %1601 = shalt.err (!%p1598_p12)
}
  0x1e   :  { %s1816_s29 = smov 128   ;;  %s1817_s30 = smov 8  }
  0x1f   :  { %27 = dma.hbm_to_vmem [thread:$0]  %s2147_s2, 14336, %s22_s21, [#allocation7], %s1816_s29, %s1816_s29, %s1817_s30  }
  0x20   :  { %1796 = dma.done.wait [#allocation7], 14336  }
  0x21   :  { %1797 = vsyncadd [#allocation7], 4294952960  ;;  %s33_s7 = sld [smem:[#allocation5]]  ;;  %s1818_s8 = smov [#allocation2]  }
  0x22   :  { %s43_s9 = sshll.u32 %s1818_s8, 4  ;;  %s1882_s10 = sld [smem:[#allocation5 + $0x1]]  ;;  %s1880_s9 = int_to_ptr.vmem [resolvable:$true] %s43_s9 }
  0x23   :  { %s1819_s11 = smov [#allocation2 + $0x1]   ;;  %s1884_s13 = sld [smem:[#allocation5 + $0x2]] }
  0x24   :  { %s59_s12 = sshll.u32 %s1819_s11, 4  ;;  %s1820_s14 = smov [#allocation2 + $0x2]   ;;  %s1886_s12 = int_to_ptr.vmem [resolvable:$true] %s59_s12 }
  0x25   :  { %s75_s15 = sshll.u32 %s1820_s14, 4  ;;  %s1888_s16 = sld [smem:[#allocation5 + $0x3]]  ;;  %s1890_s15 = int_to_ptr.vmem [resolvable:$true] %s75_s15 }
  0x26   :  { %s1821_s17 = smov [#allocation2 + $0x3]   ;;  %s1901_s25 = scalar_lea.hbm %s2146_s1, 896 }
  0x27   :  { %s974_s2 = sshll.u32 %s33_s7, 4  ;;  %s1892_s18 = sshll.u32 %s1821_s17, 4  ;;  %s92_s18 = int_to_ptr.vmem [resolvable:$true] %s1892_s18 }
  0x28   :  { %s35_s21 = scalar_lea.hbm %s2146_s1, %s974_s2  ;;  %s976_s22 = sshll.u32 %s1882_s10, 4 }
  0x29   :  { %s1602_s23 = scalar_lea.hbm %s35_s21, 16  ;;  %p1605_p0 = scmp.lt.u32.totalorder %s35_s21, %s2146_s1 }
  0x2a   :  { %p1603_p13 = scmp.ne.s32.totalorder %s35_s21, %s1602_s23  ;;  %p1606_p1 = scmp.lt.u32.totalorder %s1901_s25, %s1602_s23 }
  0x2b   :  { %p1608_p3 = scmp.lt.u32.totalorder %s1602_s23, %s35_s21 }
  0x2c   :  { %p1607_p2 = por %p1606_p1, %p1605_p0 }
  0x2e   :  { %p1609_p4 = por %p1608_p3, %p1607_p2 }
  0x30   :  { %p1610_p5 = pnand %p1609_p4, %p1603_p13 }
  0x32   :  { %1613 = shalt.err (!%p1610_p5)  }
  0x33   :  { %s1614_s28 = scalar_lea.vmem %s1880_s9, 16  ;;  %s1910_s29 = scalar_lea.vmem %s1880_s9, 128 }
  0x34   :  { %p1615_p6 = scmp.ne.s32.totalorder %s1880_s9, %s1614_s28  ;;  %p1619_p7 = scmp.lt.s32.totalorder %s1880_s9, %s1880_s9 }
  0x35   :  { %p1620_p8 = scmp.lt.s32.totalorder %s1910_s29, %s1614_s28 }
  0x37   :  { %p1621_p9 = por %p1620_p8, %p1619_p7 }
  0x39   :  { %p1622_p10 = pnand %p1621_p9, %p1615_p6 }
  0x3b   :  { %1625 = shalt.err (!%p1622_p10)  }
  0x3c   :  { %46 = dma.hbm_to_vmem [thread:$0]  %s35_s21, 16, %s1880_s9, [#allocation3] }
  0x3d   :  { %s49_s6 = scalar_lea.hbm %s2146_s1, %s976_s22  ;;  %s978_s7 = sshll.u32 %s1884_s13, 4 }
  0x3e   :  { %s1626_s8 = scalar_lea.hbm %s49_s6, 16  ;;  %p1629_p12 = scmp.lt.u32.totalorder %s49_s6, %s2146_s1 }
  0x3f   :  { %p1627_p11 = scmp.ne.s32.totalorder %s49_s6, %s1626_s8  ;;  %p1630_p13 = scmp.lt.u32.totalorder %s1901_s25, %s1626_s8 }
  0x40   :  { %p1632_p1 = scmp.lt.u32.totalorder %s1626_s8, %s49_s6 }
  0x41   :  { %p1631_p0 = por %p1630_p13, %p1629_p12 }
  0x43   :  { %p1633_p2 = por %p1632_p1, %p1631_p0 }
  0x45   :  { %p1634_p3 = pnand %p1633_p2, %p1627_p11 }
  0x47   :  { %1637 = shalt.err (!%p1634_p3)  }
  0x48   :  { %s1638_s14 = scalar_lea.vmem %s1886_s12, 16  ;;  %p1643_p5 = scmp.lt.s32.totalorder %s1886_s12, %s1880_s9 }
  0x49   :  { %p1639_p4 = scmp.ne.s32.totalorder %s1886_s12, %s1638_s14  ;;  %p1644_p6 = scmp.lt.s32.totalorder %s1910_s29, %s1638_s14 }
  0x4b   :  { %p1645_p7 = por %p1644_p6, %p1643_p5 }
  0x4d   :  { %p1646_p8 = pnand %p1645_p7, %p1639_p4 }
  0x4f   :  { %1649 = shalt.err (!%p1646_p8)  }
  0x50   :  { %62 = dma.hbm_to_vmem [thread:$0]  %s49_s6, 16, %s1886_s12, [#allocation3 + $0x1] }
  0x51   :  { %s65_s17 = scalar_lea.hbm %s2146_s1, %s978_s7  ;;  %s980_s19 = sshll.u32 %s1888_s16, 4 }
  0x52   :  { %s1650_s20 = scalar_lea.hbm %s65_s17, 16  ;;  %p1653_p10 = scmp.lt.u32.totalorder %s65_s17, %s2146_s1 }
  0x53   :  { %p1651_p9 = scmp.ne.s32.totalorder %s65_s17, %s1650_s20  ;;  %p1654_p11 = scmp.lt.u32.totalorder %s1901_s25, %s1650_s20 }
  0x54   :  { %p1656_p13 = scmp.lt.u32.totalorder %s1650_s20, %s65_s17 }
  0x55   :  { %p1655_p12 = por %p1654_p11, %p1653_p10 }
  0x57   :  { %p1657_p0 = por %p1656_p13, %p1655_p12 }
  0x59   :  { %p1658_p1 = pnand %p1657_p0, %p1651_p9 }
  0x5b   :  { %1661 = shalt.err (!%p1658_p1)  }
  0x5c   :  { %s1662_s12 = scalar_lea.vmem %s1890_s15, 16  ;;  %p1667_p3 = scmp.lt.s32.totalorder %s1890_s15, %s1880_s9 }
  0x5d   :  { %p1663_p2 = scmp.ne.s32.totalorder %s1890_s15, %s1662_s12  ;;  %p1668_p4 = scmp.lt.s32.totalorder %s1910_s29, %s1662_s12 }
  0x5f   :  { %p1669_p5 = por %p1668_p4, %p1667_p3 }
  0x61   :  { %p1670_p6 = pnand %p1669_p5, %p1663_p2 }
  0x63   :  { %1673 = shalt.err (!%p1670_p6)  }
  0x64   :  { %78 = dma.hbm_to_vmem [thread:$0]  %s65_s17, 16, %s1890_s15, [#allocation3 + $0x2] }
  0x65   :  { %s81_s0 = scalar_lea.hbm %s2146_s1, %s980_s19 }
  0x66   :  { %s1674_s24 = scalar_lea.hbm %s81_s0, 16  ;;  %p1677_p8 = scmp.lt.u32.totalorder %s81_s0, %s2146_s1 }
  0x67   :  { %p1675_p7 = scmp.ne.s32.totalorder %s81_s0, %s1674_s24  ;;  %p1678_p9 = scmp.lt.u32.totalorder %s1901_s25, %s1674_s24 }
  0x68   :  { %p1680_p11 = scmp.lt.u32.totalorder %s1674_s24, %s81_s0 }
  0x69   :  { %p1679_p10 = por %p1678_p9, %p1677_p8 }
  0x6b   :  { %p1681_p12 = por %p1680_p11, %p1679_p10 }
  0x6d   :  { %p1682_p13 = pnand %p1681_p12, %p1675_p7 }
  0x6f   :  { %1685 = shalt.err (!%p1682_p13)  }
  0x70   :  { %s1686_s28 = scalar_lea.vmem %s92_s18, 16  ;;  %p1691_p1 = scmp.lt.s32.totalorder %s92_s18, %s1880_s9 }
  0x71   :  { %p1687_p0 = scmp.ne.s32.totalorder %s92_s18, %s1686_s28  ;;  %p1692_p2 = scmp.lt.s32.totalorder %s1910_s29, %s1686_s28 }
  0x73   :  { %p1693_p3 = por %p1692_p2, %p1691_p1 }
  0x75   :  { %p1694_p4 = pnand %p1693_p3, %p1687_p0 }
  0x77   :  { %1697 = shalt.err (!%p1694_p4)  }
  0x78   :  { %94 = dma.hbm_to_vmem [thread:$0]  %s81_s0, 16, %s92_s18, [#allocation3 + $0x3] }
  0x79   :  { %s981_s15 = sld [smem:[#allocation5 + $0x4]]  ;;  %s1822_s30 = smov [#allocation2 + $0x4]  }
  0x7a   :  { %s107_s5 = sshll.u32 %s1822_s30, 4  ;;  %s1954_s6 = sld [smem:[#allocation5 + $0x5]]  ;;  %s108_s5 = int_to_ptr.vmem [resolvable:$true] %s107_s5 }
  0x7b   :  { %s1823_s7 = smov [#allocation2 + $0x5]   ;;  %s1956_s10 = sld [smem:[#allocation5 + $0x6]] }
  0x7c   :  { %s123_s8 = sshll.u32 %s1823_s7, 4  ;;  %s1824_s11 = smov [#allocation2 + $0x6]   ;;  %s1958_s8 = int_to_ptr.vmem [resolvable:$true] %s123_s8 }
  0x7d   :  { %s139_s14 = sshll.u32 %s1824_s11, 4  ;;  %s1960_s13 = sld [smem:[#allocation5 + $0x7]]  ;;  %s1962_s14 = int_to_ptr.vmem [resolvable:$true] %s139_s14 }
  0x7f   :  { %s982_s2 = sshll.u32 %s981_s15, 4 }
  0x80   :  { %s97_s19 = scalar_lea.hbm %s2146_s1, %s982_s2  ;;  %s984_s20 = sshll.u32 %s1954_s6, 4 }
  0x81   :  { %s1698_s21 = scalar_lea.hbm %s97_s19, 16  ;;  %p1701_p6 = scmp.lt.u32.totalorder %s97_s19, %s2146_s1 }
  0x82   :  { %p1699_p5 = scmp.ne.s32.totalorder %s97_s19, %s1698_s21  ;;  %p1702_p7 = scmp.lt.u32.totalorder %s1901_s25, %s1698_s21 }
  0x83   :  { %p1704_p9 = scmp.lt.u32.totalorder %s1698_s21, %s97_s19 }
  0x84   :  { %p1703_p8 = por %p1702_p7, %p1701_p6 }
  0x86   :  { %p1705_p10 = por %p1704_p9, %p1703_p8 }
  0x88   :  { %p1706_p11 = pnand %p1705_p10, %p1699_p5 }
  0x8a   :  { %1709 = shalt.err (!%p1706_p11)  }
  0x8b   :  { %s1710_s16 = scalar_lea.vmem %s108_s5, 16  ;;  %p1715_p13 = scmp.lt.s32.totalorder %s108_s5, %s1880_s9 }
  0x8c   :  { %p1711_p12 = scmp.ne.s32.totalorder %s108_s5, %s1710_s16  ;;  %p1716_p0 = scmp.lt.s32.totalorder %s1910_s29, %s1710_s16 }
  0x8e   :  { %p1717_p1 = por %p1716_p0, %p1715_p13 }
  0x90   :  { %p1718_p2 = pnand %p1717_p1, %p1711_p12 }
  0x92   :  { %1721 = shalt.err (!%p1718_p2)  }
  0x93   :  { %110 = dma.hbm_to_vmem [thread:$0]  %s97_s19, 16, %s108_s5, [#allocation3 + $0x4] }
  0x94   :  { %s113_s24 = scalar_lea.hbm %s2146_s1, %s984_s20  ;;  %s986_s26 = sshll.u32 %s1956_s10, 4 }
  0x95   :  { %s1722_s27 = scalar_lea.hbm %s113_s24, 16  ;;  %p1725_p4 = scmp.lt.u32.totalorder %s113_s24, %s2146_s1 }
  0x96   :  { %p1723_p3 = scmp.ne.s32.totalorder %s113_s24, %s1722_s27  ;;  %p1726_p5 = scmp.lt.u32.totalorder %s1901_s25, %s1722_s27 }
  0x97   :  { %p1728_p7 = scmp.lt.u32.totalorder %s1722_s27, %s113_s24 }
  0x98   :  { %p1727_p6 = por %p1726_p5, %p1725_p4 }
  0x9a   :  { %p1729_p8 = por %p1728_p7, %p1727_p6 }
  0x9c   :  { %p1730_p9 = pnand %p1729_p8, %p1723_p3 }
  0x9e   :  { %1733 = shalt.err (!%p1730_p9)  }
  0x9f   :  { %s1734_s30 = scalar_lea.vmem %s1958_s8, 16  ;;  %p1739_p11 = scmp.lt.s32.totalorder %s1958_s8, %s1880_s9 }
  0xa0   :  { %p1735_p10 = scmp.ne.s32.totalorder %s1958_s8, %s1734_s30  ;;  %p1740_p12 = scmp.lt.s32.totalorder %s1910_s29, %s1734_s30 }
  0xa2   :  { %p1741_p13 = por %p1740_p12, %p1739_p11 }
  0xa4   :  { %p1742_p0 = pnand %p1741_p13, %p1735_p10 }
  0xa6   :  { %1745 = shalt.err (!%p1742_p0)  }
  0xa7   :  { %126 = dma.hbm_to_vmem [thread:$0]  %s113_s24, 16, %s1958_s8, [#allocation3 + $0x5] }
  0xa8   :  { %s129_s7 = scalar_lea.hbm %s2146_s1, %s986_s26  ;;  %s988_s10 = sshll.u32 %s1960_s13, 4 }
  0xa9   :  { %s1746_s11 = scalar_lea.hbm %s129_s7, 16  ;;  %p1749_p2 = scmp.lt.u32.totalorder %s129_s7, %s2146_s1 }
  0xaa   :  { %p1747_p1 = scmp.ne.s32.totalorder %s129_s7, %s1746_s11  ;;  %p1750_p3 = scmp.lt.u32.totalorder %s1901_s25, %s1746_s11 }
  0xab   :  { %p1752_p5 = scmp.lt.u32.totalorder %s1746_s11, %s129_s7 }
  0xac   :  { %p1751_p4 = por %p1750_p3, %p1749_p2 }
  0xae   :  { %p1753_p6 = por %p1752_p5, %p1751_p4 }
  0xb0   :  { %p1754_p7 = pnand %p1753_p6, %p1747_p1 }
  0xb2   :  { %1757 = shalt.err (!%p1754_p7)  }
  0xb3   :  { %s1758_s8 = scalar_lea.vmem %s1962_s14, 16  ;;  %p1763_p9 = scmp.lt.s32.totalorder %s1962_s14, %s1880_s9 }
  0xb4   :  { %p1759_p8 = scmp.ne.s32.totalorder %s1962_s14, %s1758_s8  ;;  %p1764_p10 = scmp.lt.s32.totalorder %s1910_s29, %s1758_s8 }
  0xb6   :  { %p1765_p11 = por %p1764_p10, %p1763_p9 }
  0xb8   :  { %p1766_p12 = pnand %p1765_p11, %p1759_p8 }
  0xba   :  { %1769 = shalt.err (!%p1766_p12)  }
  0xbb   :  { %142 = dma.hbm_to_vmem [thread:$0]  %s129_s7, 16, %s1962_s14, [#allocation3 + $0x6] }
  0xbc   :  { %s145_s19 = scalar_lea.hbm %s2146_s1, %s988_s10  ;;  %s1825_s20 = smov [#allocation2 + $0x7]  }
  0xbd   :  { %s155_s21 = sshll.u32 %s1825_s20, 4  ;;  %s1770_s22 = scalar_lea.hbm %s145_s19, 16  ;;  %s156_s21 = int_to_ptr.vmem [resolvable:$true] %s155_s21 }
  0xbe   :  { %p1771_p13 = scmp.ne.s32.totalorder %s145_s19, %s1770_s22  ;;  %p1773_p0 = scmp.lt.u32.totalorder %s145_s19, %s2146_s1 }
  0xbf   :  { %p1774_p1 = scmp.lt.u32.totalorder %s1901_s25, %s1770_s22  ;;  %p1776_p3 = scmp.lt.u32.totalorder %s1770_s22, %s145_s19 }
  0xc1   :  { %p1775_p2 = por %p1774_p1, %p1773_p0 }
  0xc3   :  { %p1777_p4 = por %p1776_p3, %p1775_p2 }
  0xc5   :  { %p1778_p5 = pnand %p1777_p4, %p1771_p13 }
  0xc7   :  { %1781 = shalt.err (!%p1778_p5)  }
  0xc8   :  { %s1782_s14 = scalar_lea.vmem %s156_s21, 16  ;;  %p1787_p7 = scmp.lt.s32.totalorder %s156_s21, %s1880_s9 }
  0xc9   :  { %p1783_p6 = scmp.ne.s32.totalorder %s156_s21, %s1782_s14  ;;  %p1788_p8 = scmp.lt.s32.totalorder %s1910_s29, %s1782_s14 }
  0xcb   :  { %p1789_p9 = por %p1788_p8, %p1787_p7 }
  0xcd   :  { %p1790_p10 = pnand %p1789_p9, %p1783_p6 }
  0xcf   :  { %1793 = shalt.err (!%p1790_p10)  }
  0xd0   :  { %158 = dma.hbm_to_vmem [thread:$0]  %s145_s19, 16, %s156_s21, [#allocation3 + $0x7] }
  0xd1   :  { %1798 = dma.done.wait [#allocation3], 16 }
  0xd2   :  { %1799 = vsyncadd [#allocation3], 4294967280 }
  0xd3   :  { %1800 = dma.done.wait [#allocation3 + $0x1], 16 }
  0xd4   :  { %1801 = vsyncadd [#allocation3 + $0x1], 4294967280 }
  0xd5   :  { %1802 = dma.done.wait [#allocation3 + $0x2], 16 }
  0xd6   :  { %1803 = vsyncadd [#allocation3 + $0x2], 4294967280 }
  0xd7   :  { %1804 = dma.done.wait [#allocation3 + $0x3], 16 }
  0xd8   :  { %1805 = vsyncadd [#allocation3 + $0x3], 4294967280 }
  0xd9   :  { %1806 = dma.done.wait [#allocation3 + $0x4], 16 }
  0xda   :  { %1807 = vsyncadd [#allocation3 + $0x4], 4294967280 }
  0xdb   :  { %1808 = dma.done.wait [#allocation3 + $0x5], 16 }
  0xdc   :  { %1809 = vsyncadd [#allocation3 + $0x5], 4294967280 }
  0xdd   :  { %1810 = dma.done.wait [#allocation3 + $0x6], 16 }
  0xde   :  { %1811 = vsyncadd [#allocation3 + $0x6], 4294967280 }
  0xdf   :  { %1812 = dma.done.wait [#allocation3 + $0x7], 16 }
  0xe0   :  { %1813 = vsyncadd [#allocation3 + $0x7], 4294967280  ;;  %v1826_v0 = vmov 0.0|0.0   ;;  %vm1827_vm0 = vmmov 0   ;;  %v1828_v1 = vmov 0.0   ;;  %v181_v2 = vld [vmem:[#allocation6] sm:$0xff] }
  0xe1   :  { %1374 = vmatprep.subr.bf16.mxu0 %v1826_v0  ;;  %1161 = vmatprep.mubr.msk.f32.mxu0 %vm1827_vm0, %v1828_v1  ;;  %v182_v3 = vld [vmem:[#allocation6 + $0x8] sm:$0xff]  ;;  %v183_v4 = vld [vmem:[#allocation6 + $0x10] sm:$0xff]  ;;  %v184_v6 = vld [vmem:[#allocation6 + $0x18] sm:$0xff] }
  0xe2   :  { %1398 = vmatprep.subr.bf16.mxu1 %v1826_v0  ;;  %1196 = vmatprep.mubr.msk.f32.mxu1 %vm1827_vm0, %v1828_v1  ;;  %v1375_v5 = vpack.c.bf16 %v182_v3, %v181_v2  ;;  %v1378_v7 = vpack.c.bf16 %v184_v6, %v183_v4  ;;  %v185_v8 = vld [vmem:[#allocation6 + $0x20] sm:$0xff]  ;;  %v186_v9 = vld [vmem:[#allocation6 + $0x28] sm:$0xff]  ;;  %v286_v12 = vld [vmem:[#allocation6 + $0x90] sm:$0xff]  ;;  %v177_v4 = vlaneseq  ;;  %v1829_v6 = vmov 0.5  }
  0xe3   :  { %v284_v10 = vld [vmem:[#allocation6 + $0x80] sm:$0xff]  ;;  %v285_v11 = vld [vmem:[#allocation6 + $0x88] sm:$0xff]  ;;  %v287_v13 = vld [vmem:[#allocation6 + $0x98] sm:$0xff]  ;;  %v1381_v14 = vpack.c.bf16 %v186_v9, %v185_v8 }
  0xe4   :  { %1376 = vmatpush3.bf16.msra.mxu0 %v1375_v5  ;;  %v1399_v15 = vpack.c.bf16 %v285_v11, %v284_v10  ;;  %v187_v16 = vld [vmem:[#allocation6 + $0x30] sm:$0xff]  ;;  %v188_v17 = vld [vmem:[#allocation6 + $0x38] sm:$0xff]  ;;  %v1402_v18 = vpack.c.bf16 %v287_v13, %v286_v12  ;;  %v288_v19 = vld [vmem:[#allocation6 + $0xa0] sm:$0xff]  ;;  %v2040_v5 = vshrl.u32 %v177_v4, 7 }
  0xe5   :  { %1377 = vmatprep.subr.bf16.mxu0 %v1826_v0  ;;  %v289_v20 = vld [vmem:[#allocation6 + $0xa8] sm:$0xff]  ;;  %v1384_v21 = vpack.c.bf16 %v188_v17, %v187_v16  ;;  %v189_v22 = vld [vmem:[#allocation6 + $0x40] sm:$0xff]  ;;  %v290_v25 = vld [vmem:[#allocation6 + $0xb0] sm:$0xff] }
  0xe6   :  { %1400 = vmatpush3.bf16.msra.mxu1 %v1399_v15  ;;  %v190_v23 = vld [vmem:[#allocation6 + $0x48] sm:$0xff]  ;;  %v1405_v24 = vpack.c.bf16 %v289_v20, %v288_v19  ;;  %v291_v26 = vld [vmem:[#allocation6 + $0xb8] sm:$0xff]  ;;  %v191_v28 = vld [vmem:[#allocation6 + $0x50] sm:$0xff]  ;;  %vm180_vm1 = vcmp.eq.s32.totalorder %v2040_v5, 1  ;;  %vm179_vm2 = vcmp.eq.s32.totalorder %v2040_v5, 0 }
  0xe7   :  { %1401 = vmatprep.subr.bf16.mxu1 %v1826_v0  ;;  %v1387_v27 = vpack.c.bf16 %v190_v23, %v189_v22  ;;  %v192_v29 = vld [vmem:[#allocation6 + $0x58] sm:$0xff]  ;;  %v1408_v30 = vpack.c.bf16 %v291_v26, %v290_v25  ;;  %v292_v31 = vld [vmem:[#allocation6 + $0xc0] sm:$0xff]  ;;  %v293_v32 = vld [vmem:[#allocation6 + $0xc8] sm:$0xff]  ;;  %v267_v9 = vsel %vm179_vm2, 1.0, %v1829_v6 }
  0xe8   :  { %1379 = vmatpush3.bf16.msra.mxu0 %v1378_v7  ;;  %v1390_v33 = vpack.c.bf16 %v192_v29, %v191_v28  ;;  %v193_v34 = vld [vmem:[#allocation6 + $0x60] sm:$0xff]  ;;  %v194_v35 = vld [vmem:[#allocation6 + $0x68] sm:$0xff]  ;;  %v1411_v36 = vpack.c.bf16 %v293_v32, %v292_v31  ;;  %v195_v38 = vld [vmem:[#allocation6 + $0x70] sm:$0xff]  ;;  %v268_v7 = vsel %vm180_vm1, 0.70710677, %v1829_v6 }
  0xe9   :  { %1380 = vmatprep.subr.bf16.mxu0 %v1826_v0  ;;  %v1393_v37 = vpack.c.bf16 %v194_v35, %v193_v34  ;;  %v196_v39 = vld [vmem:[#allocation6 + $0x78] sm:$0xff]  ;;  %v294_v42 = vld [vmem:[#allocation6 + $0xd0] sm:$0xff]  ;;  %v296_v45 = vld [vmem:[#allocation6 + $0xe0] sm:$0xff]  ;;  %v269_v10 = vsel %vm179_vm2, 0.0, %v268_v7 }
  0xea   :  { %1403 = vmatpush3.bf16.msra.mxu1 %v1402_v18  ;;  %v1396_v40 = vpack.c.bf16 %v196_v39, %v195_v38  ;;  %v176_v41 = vld [vmem:[#allocation2] sm:$0xff]  ;;  %v297_v46 = vld [vmem:[#allocation6 + $0xe8] sm:$0xff]  ;;  %v298_v48 = vld [vmem:[#allocation6 + $0xf0] sm:$0xff] }
  0xeb   :  { %1404 = vmatprep.subr.bf16.mxu1 %v1826_v0  ;;  %v295_v43 = vld [vmem:[#allocation6 + $0xd8] sm:$0xff]  ;;  %v1417_v47 = vpack.c.bf16 %v297_v46, %v296_v45  ;;  %v388_v51 = vld [vmem:[#allocation6 + $0x100] sm:$0xff]  ;;  %v389_v52 = vld [vmem:[#allocation6 + $0x108] sm:$0xff]  ;;  %v1831_v46 = vmov 0.25  }
  0xec   :  { %1382 = vmatpush3.bf16.msra.mxu0 %v1381_v14  ;;  %v1414_v44 = vpack.c.bf16 %v295_v43, %v294_v42  ;;  %v299_v49 = vld [vmem:[#allocation6 + $0xf8] sm:$0xff]  ;;  %v390_v53 = vld [vmem:[#allocation6 + $0x110] sm:$0xff]  ;;  %v1423_v54 = vpack.c.bf16 %v389_v52, %v388_v51  ;;  %v392_v57 = vld [vmem:[#allocation6 + $0x120] sm:$0xff]  ;;  %v1830_v43 = vmov 0.75  }
  0xed   :  { %1383 = vmatprep.subr.bf16.mxu0 %v1826_v0  ;;  %v1420_v50 = vpack.c.bf16 %v299_v49, %v298_v48  ;;  %v391_v55 = vld [vmem:[#allocation6 + $0x118] sm:$0xff]  ;;  %v393_v58 = vld [vmem:[#allocation6 + $0x128] sm:$0xff]  ;;  %v394_v60 = vld [vmem:[#allocation6 + $0x130] sm:$0xff] }
  0xee   :  { %1406 = vmatpush3.bf16.msra.mxu1 %v1405_v24  ;;  %v1426_v56 = vpack.c.bf16 %v391_v55, %v390_v53  ;;  %v1429_v59 = vpack.c.bf16 %v393_v58, %v392_v57  ;;  %v395_v61 = vld [vmem:[#allocation6 + $0x138] sm:$0xff]  ;;  %v396_v63 = vld [vmem:[#allocation6 + $0x140] sm:$0xff]  ;;  %v397_v2 = vld [vmem:[#allocation6 + $0x148] sm:$0xff] }
  0xef   :  { %1407 = vmatprep.subr.bf16.mxu1 %v1826_v0  ;;  %v1432_v62 = vpack.c.bf16 %v395_v61, %v394_v60  ;;  %v1435_v3 = vpack.c.bf16 %v397_v2, %v396_v63  ;;  %v989_v15 = vld [vmem:[%s2148_s3] ss:$0 sm:$0xff]  ;;  %v398_v19 = vld [vmem:[#allocation6 + $0x150] sm:$0xff]  ;;  %v400_v22 = vld [vmem:[#allocation6 + $0x160] sm:$0xff] }
  0xf0   :  { %1385 = vmatpush3.bf16.msra.mxu0 %v1384_v21  ;;  %v399_v20 = vld [vmem:[#allocation6 + $0x158] sm:$0xff]  ;;  %v401_v23 = vld [vmem:[#allocation6 + $0x168] sm:$0xff]  ;;  %v402_v25 = vld [vmem:[#allocation6 + $0x170] sm:$0xff] }
  0xf1   :  { %1386 = vmatprep.subr.bf16.mxu0 %v1826_v0  ;;  %v1438_v21 = vpack.c.bf16 %v399_v20, %v398_v19  ;;  %v1441_v24 = vpack.c.bf16 %v401_v23, %v400_v22  ;;  %v403_v26 = vld [vmem:[#allocation6 + $0x178] sm:$0xff]  ;;  %v492_v28 = vld [vmem:[#allocation6 + $0x180] sm:$0xff]  ;;  %v493_v29 = vld [vmem:[#allocation6 + $0x188] sm:$0xff]  ;;  %v1832_v20 = vmov 0.8  }
  0xf2   :  { %1409 = vmatpush3.bf16.msra.mxu1 %v1408_v30  ;;  %v494_v30 = vld [vmem:[#allocation6 + $0x190] sm:$0xff]  ;;  %v1447_v31 = vpack.c.bf16 %v493_v29, %v492_v28  ;;  %v495_v32 = vld [vmem:[#allocation6 + $0x198] sm:$0xff]  ;;  %v496_v34 = vld [vmem:[#allocation6 + $0x1a0] sm:$0xff]  ;;  %v1833_v23 = vmov 0.2  }
  0xf3   :  { %1410 = vmatprep.subr.bf16.mxu1 %v1826_v0  ;;  %v497_v35 = vld [vmem:[#allocation6 + $0x1a8] sm:$0xff]  ;;  %v499_v38 = vld [vmem:[#allocation6 + $0x1b8] sm:$0xff]  ;;  %v502_v57 = vld [vmem:[#allocation6 + $0x1d0] sm:$0xff] }
  0xf4   :  { %1388 = vmatpush3.bf16.msra.mxu0 %v1387_v27  ;;  %v1444_v27 = vpack.c.bf16 %v403_v26, %v402_v25  ;;  %v991_v53 = vld [vmem:[%s2148_s3 + $0x1] ss:$0 sm:$0xff]  ;;  %v504_v60 = vld [vmem:[#allocation6 + $0x1e0] sm:$0xff]  ;;  %v505_v61 = vld [vmem:[#allocation6 + $0x1e8] sm:$0xff] }
  0xf5   :  { %1389 = vmatprep.subr.bf16.mxu0 %v1826_v0  ;;  %v503_v58 = vld [vmem:[#allocation6 + $0x1d8] sm:$0xff]  ;;  %v506_v63 = vld [vmem:[#allocation6 + $0x1f0] sm:$0xff]  ;;  %v596_v4 = vld [vmem:[#allocation6 + $0x200] sm:$0xff] }
  0xf6   :  { %1412 = vmatpush3.bf16.msra.mxu1 %v1411_v36  ;;  %v1453_v36 = vpack.c.bf16 %v497_v35, %v496_v34  ;;  %v507_v2 = vld [vmem:[#allocation6 + $0x1f8] sm:$0xff]  ;;  %v597_v6 = vld [vmem:[#allocation6 + $0x208] sm:$0xff]  ;;  %v598_v7 = vld [vmem:[#allocation6 + $0x210] sm:$0xff] }
  0xf7   :  { %1413 = vmatprep.subr.bf16.mxu1 %v1826_v0  ;;  %v606_v34 = vld [vmem:[#allocation6 + $0x250] sm:$0xff]  ;;  %v607_v35 = vld [vmem:[#allocation6 + $0x258] sm:$0xff] }
  0xf8   :  { %1391 = vmatpush3.bf16.msra.mxu0 %v1390_v33  ;;  %v1450_v33 = vpack.c.bf16 %v495_v32, %v494_v30  ;;  %v993_v30 = vld [vmem:[%s2148_s3 + $0x2] ss:$0 sm:$0xff] }
  0xf9   :  { %1392 = vmatprep.subr.bf16.mxu0 %v1826_v0 }
  0xfa   :  { %1415 = vmatpush3.bf16.msra.mxu1 %v1414_v44  ;;  %v371_v44 = vsel %vm180_vm1, 1.5, %v1830_v43  ;;  %v700_v43 = vld [vmem:[#allocation6 + $0x280] sm:$0xff] }
  0xfb   :  { %1416 = vmatprep.subr.bf16.mxu1 %v1826_v0  ;;  %v372_v48 = vsel %vm179_vm2, 0.0, %v371_v44  ;;  %v701_v44 = vld [vmem:[#allocation6 + $0x288] sm:$0xff] }
  0xfc   :  { %1394 = vmatpush3.bf16.msra.mxu0 %v1393_v37  ;;  %v498_v37 = vld [vmem:[#allocation6 + $0x1b0] sm:$0xff] }
  0xfd   :  { %1395 = vmatprep.subr.bf16.mxu0 %v1826_v0  ;;  %v1456_v39 = vpack.c.bf16 %v499_v38, %v498_v37  ;;  %v608_v37 = vld [vmem:[#allocation6 + $0x260] sm:$0xff]  ;;  %v609_v38 = vld [vmem:[#allocation6 + $0x268] sm:$0xff] }
  0xfe   :  { %1418 = vmatpush3.bf16.msra.mxu1 %v1417_v47  ;;  %v370_v47 = vsel %vm179_vm2, 1.0, %v1831_v46  ;;  %v1495_v46 = vpack.c.bf16 %v701_v44, %v700_v43 }
  0xff   :  { %1419 = vmatprep.subr.bf16.mxu1 %v1826_v0 }
 0x100   :  { %1397 = vmatpush3.bf16.msra.mxu0 %v1396_v40  ;;  %v500_v40 = vld [vmem:[#allocation6 + $0x1c0] sm:$0xff] }
 0x101   :  { %1422 = vmatprep.subr.bf16.mxu0 %v1826_v0 }
 0x102   :  { %1421 = vmatpush3.bf16.msra.mxu1 %v1420_v50 }
 0x103   :  { %1162 = vmatmul.mubr.f32.vlgmr.msra.gmra.mrb[0].mxu0 %v176_v41  ;;  %1446 = vmatprep.subr.bf16.mxu1 %v1826_v0  ;;  %v501_v41 = vld [vmem:[#allocation6 + $0x1c8] sm:$0xff] }
 0x104   :  { %1231 = vmatprep.mubr.msk.f32.mxu0 %vm1827_vm0, %v1828_v1  ;;  %1424 = vmatpush3.bf16.msra.mxu0 %v1423_v54  ;;  %v1459_v42 = vpack.c.bf16 %v501_v41, %v500_v40  ;;  %v610_v40 = vld [vmem:[#allocation6 + $0x270] sm:$0xff]  ;;  %v611_v41 = vld [vmem:[#allocation6 + $0x278] sm:$0xff] }
 0x105   :  { %1425 = vmatprep.subr.bf16.mxu0 %v1826_v0 }
 0x108   :  { %1427 = vmatpush3.bf16.msra.mxu0 %v1426_v56 }
 0x109   :  { %1428 = vmatprep.subr.bf16.mxu0 %v1826_v0 }
 0x10c   :  { %1430 = vmatpush3.bf16.msra.mxu0 %v1429_v59  ;;  %v1462_v59 = vpack.c.bf16 %v503_v58, %v502_v57  ;;  %v1834_v58 = vmov 0.8333333  }
 0x10d   :  { %1431 = vmatprep.subr.bf16.mxu0 %v1826_v0 }
 0x110   :  { %1433 = vmatpush3.bf16.msra.mxu0 %v1432_v62  ;;  %v1465_v62 = vpack.c.bf16 %v505_v61, %v504_v60  ;;  %v1835_v61 = vmov 0.16666667  }
 0x111   :  { %1434 = vmatprep.subr.bf16.mxu0 %v1826_v0 }
 0x114   :  { %1436 = vmatpush3.bf16.msra.mxu0 %v1435_v3  ;;  %v1468_v3 = vpack.c.bf16 %v507_v2, %v506_v63 }
 0x115   :  { %1437 = vmatprep.subr.bf16.mxu0 %v1826_v0 }
 0x118   :  { %1439 = vmatpush3.bf16.msra.mxu0 %v1438_v21  ;;  %v475_v21 = vsel %vm180_vm1, 1.7888544, %v1832_v20  ;;  %v803_v20 = vld [vmem:[#allocation6 + $0x300] sm:$0xff] }
 0x119   :  { %1440 = vmatprep.subr.bf16.mxu0 %v1826_v0  ;;  %v476_v25 = vsel %vm179_vm2, 0.0, %v475_v21  ;;  %v804_v21 = vld [vmem:[#allocation6 + $0x308] sm:$0xff] }
 0x11c   :  { %1442 = vmatpush3.bf16.msra.mxu0 %v1441_v24  ;;  %v474_v24 = vsel %vm179_vm2, 1.0, %v1833_v23  ;;  %v806_v23 = vld [vmem:[#allocation6 + $0x318] sm:$0xff] }
 0x11d   :  { %1443 = vmatprep.subr.bf16.mxu0 %v1826_v0 }
 0x120   :  { %1445 = vmatpush3.bf16.msra.mxu0 %v1444_v27 }
 0x121   :  { %1470 = vmatprep.subr.bf16.mxu0 %v1826_v0 }
 0x1d6   :  { %v263_v8 = vpop.f32.mrb[0].mxu0 }
 0x1d7   :  { %v270_v11 = vrot.slane %v263_v8, 7  ;;  %v1163_v12 = vpop.f32.mrb[1].mxu0  ;;  %v271_v13 = vmul.f32 %v267_v9, %v263_v8  ;;  %v1471_v8 = vpack.c.bf16 %v597_v6, %v596_v4  ;;  %v599_v9 = vld [vmem:[#allocation6 + $0x218] sm:$0xff] }
 0x1d8   :  { %v601_v12 = vld [vmem:[#allocation6 + $0x228] sm:$0xff] }
 0x1d9   :  { %v272_v14 = vmul.f32 %v270_v11, %v269_v10  ;;  %v1474_v10 = vpack.c.bf16 %v599_v9, %v598_v7  ;;  %v600_v11 = vld [vmem:[#allocation6 + $0x220] sm:$0xff]  ;;  %v995_v7 = vld [vmem:[%s2148_s3 + $0x3] ss:$0 sm:$0xff] }
 0x1db   :  { %v273_v16 = vadd.f32 %v272_v14, %v271_v13  ;;  %v1477_v13 = vpack.c.bf16 %v601_v12, %v600_v11  ;;  %v602_v14 = vld [vmem:[#allocation6 + $0x230] sm:$0xff]  ;;  %v711_v12 = vld [vmem:[#allocation6 + $0x2d8] sm:$0xff] }
 0x1dc   :  { %v710_v11 = vld [vmem:[#allocation6 + $0x2d0] sm:$0xff] }
 0x1dd   :  { %v281_v17 = vadd.f32 %v989_v15, %v273_v16  ;;  %v603_v15 = vld [vmem:[#allocation6 + $0x238] sm:$0xff] }
 0x1de   :  { %v1480_v16 = vpack.c.bf16 %v603_v15, %v602_v14  ;;  %v712_v14 = vld [vmem:[#allocation6 + $0x2e0] sm:$0xff]  ;;  %v713_v15 = vld [vmem:[#allocation6 + $0x2e8] sm:$0xff] }
 0x1df   :  { %v282_v18 = vmax.f32 %v281_v17, 0.0  ;;  %v604_v17 = vld [vmem:[#allocation6 + $0x240] sm:$0xff] }
 0x1e1   :  { %1197 = vmatmul.mubr.f32.vlgmr.msra.gmra.mrb[0].mxu1 %v282_v18  ;;  %v605_v18 = vld [vmem:[#allocation6 + $0x248] sm:$0xff] }
 0x1e2   :  { %1266 = vmatprep.mubr.msk.f32.mxu1 %vm1827_vm0, %v1828_v1  ;;  %1448 = vmatpush3.bf16.msra.mxu1 %v1447_v31  ;;  %v1483_v19 = vpack.c.bf16 %v605_v18, %v604_v17  ;;  %v714_v17 = vld [vmem:[#allocation6 + $0x2f0] sm:$0xff]  ;;  %v715_v18 = vld [vmem:[#allocation6 + $0x2f8] sm:$0xff] }
 0x1e3   :  { %1449 = vmatprep.subr.bf16.mxu1 %v1826_v0 }
 0x1e6   :  { %1451 = vmatpush3.bf16.msra.mxu1 %v1450_v33 }
 0x1e7   :  { %1452 = vmatprep.subr.bf16.mxu1 %v1826_v0 }
 0x1ea   :  { %1454 = vmatpush3.bf16.msra.mxu1 %v1453_v36  ;;  %v1486_v36 = vpack.c.bf16 %v607_v35, %v606_v34  ;;  %v813_v34 = vld [vmem:[#allocation6 + $0x350] sm:$0xff]  ;;  %v814_v35 = vld [vmem:[#allocation6 + $0x358] sm:$0xff] }
 0x1eb   :  { %1455 = vmatprep.subr.bf16.mxu1 %v1826_v0 }
 0x1ee   :  { %1457 = vmatpush3.bf16.msra.mxu1 %v1456_v39  ;;  %v1489_v39 = vpack.c.bf16 %v609_v38, %v608_v37  ;;  %v1836_v37 = vmov 0.85714287  }
 0x1ef   :  { %1458 = vmatprep.subr.bf16.mxu1 %v1826_v0  ;;  %v683_v38 = vsel %vm180_vm1, 2.2677867, %v1836_v37 }
 0x1f2   :  { %1460 = vmatpush3.bf16.msra.mxu1 %v1459_v42  ;;  %v1492_v42 = vpack.c.bf16 %v611_v41, %v610_v40  ;;  %v1837_v40 = vmov 0.14285715  }
 0x1f3   :  { %1461 = vmatprep.subr.bf16.mxu1 %v1826_v0  ;;  %v682_v41 = vsel %vm179_vm2, 1.0, %v1837_v40 }
 0x1f6   :  { %1463 = vmatpush3.bf16.msra.mxu1 %v1462_v59  ;;  %v579_v59 = vsel %vm180_vm1, 2.0412414, %v1834_v58 }
 0x1f7   :  { %1464 = vmatprep.subr.bf16.mxu1 %v1826_v0  ;;  %v580_v63 = vsel %vm179_vm2, 0.0, %v579_v59 }
 0x1fa   :  { %1466 = vmatpush3.bf16.msra.mxu1 %v1465_v62  ;;  %v578_v62 = vsel %vm179_vm2, 1.0, %v1835_v61 }
 0x1fb   :  { %1467 = vmatprep.subr.bf16.mxu1 %v1826_v0 }
 0x1fe   :  { %1469 = vmatpush3.bf16.msra.mxu1 %v1468_v3 }
 0x1ff   :  { %1494 = vmatprep.subr.bf16.mxu1 %v1826_v0 }
 0x2b4   :  { %v366_v45 = vpop.f32.mrb[0].mxu1 }
 0x2b5   :  { %v373_v49 = vrot.slane %v366_v45, 7  ;;  %v1198_v50 = vpop.f32.mrb[1].mxu1  ;;  %v374_v51 = vmul.f32 %v370_v47, %v366_v45  ;;  %v702_v45 = vld [vmem:[#allocation6 + $0x290] sm:$0xff]  ;;  %v703_v47 = vld [vmem:[#allocation6 + $0x298] sm:$0xff] }
 0x2b6   :  { %v705_v50 = vld [vmem:[#allocation6 + $0x2a8] sm:$0xff] }
 0x2b7   :  { %v375_v52 = vmul.f32 %v373_v49, %v372_v48  ;;  %v1498_v48 = vpack.c.bf16 %v703_v47, %v702_v45  ;;  %v704_v49 = vld [vmem:[#allocation6 + $0x2a0] sm:$0xff]  ;;  %v997_v47 = vld [vmem:[%s2148_s3 + $0x4] ss:$0 sm:$0xff] }
 0x2b9   :  { %v376_v54 = vadd.f32 %v375_v52, %v374_v51  ;;  %v1501_v51 = vpack.c.bf16 %v705_v50, %v704_v49  ;;  %v706_v52 = vld [vmem:[#allocation6 + $0x2b0] sm:$0xff] }
 0x2bb   :  { %v385_v55 = vadd.f32 %v991_v53, %v376_v54  ;;  %v707_v53 = vld [vmem:[#allocation6 + $0x2b8] sm:$0xff] }
 0x2bc   :  { %v1504_v54 = vpack.c.bf16 %v707_v53, %v706_v52  ;;  %v816_v52 = vld [vmem:[#allocation6 + $0x368] sm:$0xff] }
 0x2bd   :  { %v386_v56 = vmax.f32 %v385_v55, 0.0  ;;  %v708_v55 = vld [vmem:[#allocation6 + $0x2c0] sm:$0xff] }
 0x2bf   :  { %1232 = vmatmul.mubr.f32.vlgmr.msra.gmra.mrb[2].mxu0 %v386_v56  ;;  %v709_v56 = vld [vmem:[#allocation6 + $0x2c8] sm:$0xff] }
 0x2c0   :  { %1301 = vmatprep.mubr.msk.f32.mxu0 %vm1827_vm0, %v1828_v1  ;;  %1472 = vmatpush3.bf16.msra.mxu0 %v1471_v8  ;;  %v1507_v57 = vpack.c.bf16 %v709_v56, %v708_v55  ;;  %v818_v55 = vld [vmem:[#allocation6 + $0x378] sm:$0xff] }
 0x2c1   :  { %1473 = vmatprep.subr.bf16.mxu0 %v1826_v0 }
 0x2c4   :  { %1475 = vmatpush3.bf16.msra.mxu0 %v1474_v10 }
 0x2c5   :  { %1476 = vmatprep.subr.bf16.mxu0 %v1826_v0 }
 0x2c8   :  { %1478 = vmatpush3.bf16.msra.mxu0 %v1477_v13  ;;  %v1510_v13 = vpack.c.bf16 %v711_v12, %v710_v11 }
 0x2c9   :  { %1479 = vmatprep.subr.bf16.mxu0 %v1826_v0 }
 0x2cc   :  { %1481 = vmatpush3.bf16.msra.mxu0 %v1480_v16  ;;  %v1513_v16 = vpack.c.bf16 %v713_v15, %v712_v14 }
 0x2cd   :  { %1482 = vmatprep.subr.bf16.mxu0 %v1826_v0 }
 0x2d0   :  { %1484 = vmatpush3.bf16.msra.mxu0 %v1483_v19  ;;  %v1516_v19 = vpack.c.bf16 %v715_v18, %v714_v17 }
 0x2d1   :  { %1485 = vmatprep.subr.bf16.mxu0 %v1826_v0 }
 0x2d4   :  { %1487 = vmatpush3.bf16.msra.mxu0 %v1486_v36  ;;  %v1534_v36 = vpack.c.bf16 %v814_v35, %v813_v34 }
 0x2d5   :  { %1488 = vmatprep.subr.bf16.mxu0 %v1826_v0 }
 0x2d8   :  { %1490 = vmatpush3.bf16.msra.mxu0 %v1489_v39 }
 0x2d9   :  { %1491 = vmatprep.subr.bf16.mxu0 %v1826_v0 }
 0x2dc   :  { %1493 = vmatpush3.bf16.msra.mxu0 %v1492_v42  ;;  %v684_v42 = vsel %vm179_vm2, 0.0, %v683_v38 }
 0x2dd   :  { %1518 = vmatprep.subr.bf16.mxu0 %v1826_v0 }
 0x392   :  { %v470_v22 = vpop.f32.mrb[2].mxu0 }
 0x393   :  { %v477_v26 = vrot.slane %v470_v22, 7  ;;  %v1233_v27 = vpop.f32.mrb[3].mxu0  ;;  %v478_v28 = vmul.f32 %v474_v24, %v470_v22  ;;  %v805_v22 = vld [vmem:[#allocation6 + $0x310] sm:$0xff] }
 0x394   :  { %v1522_v24 = vpack.c.bf16 %v806_v23, %v805_v22 }
 0x395   :  { %v479_v29 = vmul.f32 %v477_v26, %v476_v25  ;;  %v807_v25 = vld [vmem:[#allocation6 + $0x320] sm:$0xff]  ;;  %v808_v26 = vld [vmem:[#allocation6 + $0x328] sm:$0xff] }
 0x396   :  { %v1525_v27 = vpack.c.bf16 %v808_v26, %v807_v25 }
 0x397   :  { %v480_v31 = vadd.f32 %v479_v29, %v478_v28  ;;  %v809_v28 = vld [vmem:[#allocation6 + $0x330] sm:$0xff]  ;;  %v810_v29 = vld [vmem:[#allocation6 + $0x338] sm:$0xff] }
 0x399   :  { %v489_v32 = vadd.f32 %v993_v30, %v480_v31  ;;  %v1528_v30 = vpack.c.bf16 %v810_v29, %v809_v28  ;;  %v811_v31 = vld [vmem:[#allocation6 + $0x340] sm:$0xff] }
 0x39b   :  { %v490_v33 = vmax.f32 %v489_v32, 0.0  ;;  %v812_v32 = vld [vmem:[#allocation6 + $0x348] sm:$0xff] }
 0x39d   :  { %1267 = vmatmul.mubr.f32.vlgmr.msra.gmra.mrb[2].mxu1 %v490_v33  ;;  %v1531_v33 = vpack.c.bf16 %v812_v32, %v811_v31 }
 0x39e   :  { %1336 = vmatprep.mubr.msk.f32.mxu1 %vm1827_vm0, %v1828_v1  ;;  %1496 = vmatpush3.bf16.msra.mxu1 %v1495_v46 }
 0x39f   :  { %1497 = vmatprep.subr.bf16.mxu1 %v1826_v0 }
 0x3a2   :  { %1499 = vmatpush3.bf16.msra.mxu1 %v1498_v48 }
 0x3a3   :  { %1500 = vmatprep.subr.bf16.mxu1 %v1826_v0 }
 0x3a6   :  { %1502 = vmatpush3.bf16.msra.mxu1 %v1501_v51  ;;  %v815_v51 = vld [vmem:[#allocation6 + $0x360] sm:$0xff] }
 0x3a7   :  { %1503 = vmatprep.subr.bf16.mxu1 %v1826_v0  ;;  %v1537_v53 = vpack.c.bf16 %v816_v52, %v815_v51 }
 0x3aa   :  { %1505 = vmatpush3.bf16.msra.mxu1 %v1504_v54  ;;  %v817_v54 = vld [vmem:[#allocation6 + $0x370] sm:$0xff] }
 0x3ab   :  { %1506 = vmatprep.subr.bf16.mxu1 %v1826_v0  ;;  %v1540_v56 = vpack.c.bf16 %v818_v55, %v817_v54 }
 0x3ae   :  { %1508 = vmatpush3.bf16.msra.mxu1 %v1507_v57  ;;  %v1838_v57 = vmov 0.875  }
 0x3af   :  { %1509 = vmatprep.subr.bf16.mxu1 %v1826_v0  ;;  %v787_v58 = vsel %vm180_vm1, 2.4748738, %v1838_v57 }
 0x3b2   :  { %1511 = vmatpush3.bf16.msra.mxu1 %v1510_v13 }
 0x3b3   :  { %1512 = vmatprep.subr.bf16.mxu1 %v1826_v0 }
 0x3b6   :  { %1514 = vmatpush3.bf16.msra.mxu1 %v1513_v16 }
 0x3b7   :  { %1515 = vmatprep.subr.bf16.mxu1 %v1826_v0 }
 0x3ba   :  { %1517 = vmatpush3.bf16.msra.mxu1 %v1516_v19 }
 0x470   :  { %v574_v60 = vpop.f32.mrb[2].mxu1 }
 0x471   :  { %v581_v2 = vrot.slane %v574_v60, 7  ;;  %v1268_v3 = vpop.f32.mrb[3].mxu1  ;;  %v582_v4 = vmul.f32 %v578_v62, %v574_v60  ;;  %v1839_v60 = vmov 0.125   ;;  %v788_v62 = vsel %vm179_vm2, 0.0, %v787_v58 }
 0x472   :  { %v786_v61 = vsel %vm179_vm2, 1.0, %v1839_v60 }
 0x473   :  { %v583_v6 = vmul.f32 %v581_v2, %v580_v63 }
 0x475   :  { %v584_v8 = vadd.f32 %v583_v6, %v582_v4  ;;  %v999_v4 = vld [vmem:[%s2148_s3 + $0x5] ss:$0 sm:$0xff] }
 0x477   :  { %v593_v9 = vadd.f32 %v995_v7, %v584_v8  ;;  %v1001_v8 = vld [vmem:[%s2148_s3 + $0x6] ss:$0 sm:$0xff] }
 0x479   :  { %v594_v10 = vmax.f32 %v593_v9, 0.0 }
 0x47b   :  { %1302 = vmatmul.mubr.f32.vlgmr.msra.gmra.mrb[4].mxu0 %v594_v10 }
 0x47c   :  { %1371 = vmatprep.mubr.msk.f32.mxu0 %vm1827_vm0, %v1828_v1  ;;  %v1519_v1 = vpack.c.bf16 %v804_v21, %v803_v20 }
 0x47e   :  { %1520 = vmatpush3.bf16.msra.mxu0 %v1519_v1 }
 0x47f   :  { %1521 = vmatprep.subr.bf16.mxu0 %v1826_v0 }
 0x482   :  { %1523 = vmatpush3.bf16.msra.mxu0 %v1522_v24 }
 0x483   :  { %1524 = vmatprep.subr.bf16.mxu0 %v1826_v0 }
 0x486   :  { %1526 = vmatpush3.bf16.msra.mxu0 %v1525_v27 }
 0x487   :  { %1527 = vmatprep.subr.bf16.mxu0 %v1826_v0 }
 0x48a   :  { %1529 = vmatpush3.bf16.msra.mxu0 %v1528_v30 }
 0x48b   :  { %1530 = vmatprep.subr.bf16.mxu0 %v1826_v0 }
 0x48e   :  { %1532 = vmatpush3.bf16.msra.mxu0 %v1531_v33 }
 0x48f   :  { %1533 = vmatprep.subr.bf16.mxu0 %v1826_v0 }
 0x492   :  { %1535 = vmatpush3.bf16.msra.mxu0 %v1534_v36 }
 0x493   :  { %1536 = vmatprep.subr.bf16.mxu0 %v1826_v0 }
 0x496   :  { %1538 = vmatpush3.bf16.msra.mxu0 %v1537_v53 }
 0x497   :  { %1539 = vmatprep.subr.bf16.mxu0 %v1826_v0 }
 0x49a   :  { %1541 = vmatpush3.bf16.msra.mxu0 %v1540_v56 }
 0x54e   :  { %v678_v39 = vpop.f32.mrb[4].mxu0 }
 0x54f   :  { %v685_v43 = vrot.slane %v678_v39, 7  ;;  %v1303_v44 = vpop.f32.mrb[5].mxu0  ;;  %v686_v45 = vmul.f32 %v682_v41, %v678_v39 }
 0x551   :  { %v687_v46 = vmul.f32 %v685_v43, %v684_v42 }
 0x553   :  { %v688_v48 = vadd.f32 %v687_v46, %v686_v45 }
 0x555   :  { %v697_v49 = vadd.f32 %v997_v47, %v688_v48 }
 0x557   :  { %v698_v50 = vmax.f32 %v697_v49, 0.0 }
 0x559   :  { %1337 = vmatmul.mubr.f32.vlgmr.msra.gmra.mrb[4].mxu1 %v698_v50 }
 0x62c   :  { %v782_v59 = vpop.f32.mrb[4].mxu1 }
 0x62d   :  { %v789_v63 = vrot.slane %v782_v59, 7  ;;  %v1338_v2 = vpop.f32.mrb[5].mxu1  ;;  %v790_v3 = vmul.f32 %v786_v61, %v782_v59 }
 0x62f   :  { %v791_v0 = vmul.f32 %v789_v63, %v788_v62 }
 0x631   :  { %v792_v6 = vadd.f32 %v791_v0, %v790_v3 }
 0x633   :  { %v801_v7 = vadd.f32 %v999_v4, %v792_v6 }
 0x635   :  { %1372 = vmatmul.mubr.f32.vlgmr.msra.gmra.mrb[6].mxu0 %v801_v7 }
 0x708   :  { %v893_v9 = vpop.f32.mrb[6].mxu0 }
 0x709   :  { %v894_v10 = vadd.f32 %v1001_v8, %v893_v9  ;;  %v1373_v11 = vpop.f32.mrb[7].mxu0 }
 0x70b   :  { %897 = vst [vmem:[%s2149_s4] sm:$0xff] %v894_v10 }
 0x70c   :  { %902 = vsyncpa [#allocation7], 1 }
 0x70d   :  { %903 = vsyncmov [#allocation3] }
 0x710   :  { %s904_s11 = vpop.sfrf %903 }
 0x711   :  { %p1002_p11 = scmp.ne.s32.totalorder %s904_s11, 0 }
 0x713   :  { %908 = shalt.err (%p1002_p11)  }
 0x714   :  { %910 = vsyncmov [#allocation3 + $0x1] }
 0x717   :  { %s911_s2 = vpop.sfrf %910 }
 0x718   :  { %p1003_p12 = scmp.ne.s32.totalorder %s911_s2, 0 }
 0x71a   :  { %915 = shalt.err (%p1003_p12)  }
 0x71b   :  { %917 = vsyncmov [#allocation3 + $0x2] }
 0x71e   :  { %s918_s18 = vpop.sfrf %917 }
 0x71f   :  { %p1004_p13 = scmp.ne.s32.totalorder %s918_s18, 0 }
 0x721   :  { %922 = shalt.err (%p1004_p13)  }
 0x722   :  { %924 = vsyncmov [#allocation3 + $0x3] }
 0x725   :  { %s925_s3 = vpop.sfrf %924 }
 0x726   :  { %p1005_p0 = scmp.ne.s32.totalorder %s925_s3, 0 }
 0x728   :  { %929 = shalt.err (%p1005_p0)  }
 0x729   :  { %931 = vsyncmov [#allocation3 + $0x4] }
 0x72c   :  { %s932_s8 = vpop.sfrf %931 }
 0x72d   :  { %p1006_p1 = scmp.ne.s32.totalorder %s932_s8, 0 }
 0x72f   :  { %936 = shalt.err (%p1006_p1)  }
 0x730   :  { %938 = vsyncmov [#allocation3 + $0x5] }
 0x733   :  { %s939_s4 = vpop.sfrf %938 }
 0x734   :  { %p1007_p2 = scmp.ne.s32.totalorder %s939_s4, 0 }
 0x736   :  { %943 = shalt.err (%p1007_p2)  }
 0x737   :  { %945 = vsyncmov [#allocation3 + $0x6] }
 0x73a   :  { %s946_s13 = vpop.sfrf %945 }
 0x73b   :  { %p1008_p3 = scmp.ne.s32.totalorder %s946_s13, 0 }
 0x73d   :  { %950 = shalt.err (%p1008_p3)  }
 0x73e   :  { %952 = vsyncmov [#allocation3 + $0x7] }
 0x741   :  { %s953_s17 = vpop.sfrf %952 }
 0x742   :  { %p1009_p4 = scmp.ne.s32.totalorder %s953_s17, 0 }
 0x744   :  { %957 = shalt.err (%p1009_p4)  }

</bundles_post_ra>
